<compile_context>
chip_gen: v5e
topology: v5e:2x2
jax: 0.10.0
libtpu: 0.0.40
codegen_flags: <defaults>
</compile_context>

<pallas_src>
import functools

import jax
import jax.numpy as jnp
from jax.experimental import pallas as pl
from jax.experimental.pallas import tpu as pltpu

BN_EPS = 1e-5
FEAT_IN = 512          # input latent width
H1, H2 = 256, 64       # hidden widths
OUT_PAD = 8            # lane-padded output width (useful lanes: 2 or 3)
TILE_M = 512           # target rows per x tile (>=512 rows ~ 85% HBM roofline)


def _round_up(x, m):
    return (x + m - 1) // m * m


def _vmem_limit_bytes():
    """Raise the scoped-VMEM cap (defaults 16/32 MiB) but stay below physical
    capacity (128 MiB on v5e/v6e, 64 MiB on v7x)."""
    try:
        cap = pltpu.get_tpu_info().vmem_capacity_bytes
    except Exception:
        cap = 64 * 1024 * 1024
    return int(cap * 7 // 8)


def _mlp_bn_kernel(x_ref,
                   w1_ref, g1_ref, be1_ref,
                   w2_ref, g2_ref, be2_ref,
                   w3_ref, b3_ref,
                   o_ref,
                   h1_ref, h2_ref, s1_ref, ss1_ref, s2_ref, ss2_ref,
                   *, m_valid, tile_m, n_tiles, needs_mask):
    """MLP 512 -> 256(BN,ReLU) -> 64(BN,ReLU) -> OUT_PAD, training-mode BN.

    pass 1 (per grid step): layer-1 matmul on one x tile, accumulate BN1
            sum / sum-of-squares, park raw activations in VMEM scratch.
    pass 2 (last grid step): fold BN1, layer 2 chunked over the scratch
            (accumulating BN2 stats), fold BN2, layer 3 + output store.

    b1/b2 are dropped: a per-column constant bias is exactly cancelled by the
    following training-mode BatchNorm (NOT valid for eval-mode running stats).
    """
    i = pl.program_id(0)
    inv_m = jnp.float32(1.0 / m_valid)

    # ---------------- pass 1: layer-1 matmul on this x tile -----------------
    x = x_ref[...].astype(jnp.bfloat16)                           # (tile_m, 512)
    h1 = jnp.dot(x, w1_ref[...], preferred_element_type=jnp.float32)

    if needs_mask:
        # rows >= m_valid hold undefined DMA padding: zero them so they drop
        # out of the BN statistics and of every later layer.
        rows = i * tile_m + jax.lax.broadcasted_iota(jnp.int32, h1.shape, 0)
        h1 = jnp.where(rows < m_valid, h1, 0.0)

    @pl.when(i == 0)
    def _init():
        s1_ref[...] = jnp.zeros_like(s1_ref)
        ss1_ref[...] = jnp.zeros_like(ss1_ref)

    # TODO(synk): if profiling shows VPU/XLU binding, move these column sums
    # onto the idle MXU as ones(1, tile_m) @ h1 / @ (h1*h1).
    s1_ref[...] += jnp.sum(h1, axis=0, keepdims=True)
    ss1_ref[...] += jnp.sum(h1 * h1, axis=0, keepdims=True)

    r0 = pl.multiple_of(i * tile_m, tile_m)
    h1_ref[pl.ds(r0, tile_m), :] = h1

    # -------- pass 2 (last grid step): BN1 -> L2 -> BN2 -> L3 -> store ------
    @pl.when(i == n_tiles - 1)
    def _finalize():
        # TODO(synk): E[h^2]-E[h]^2 cancels if |mean| >> std; switch to a
        # centered second sweep over h1_ref if that regime ever matters.
        mean1 = s1_ref[...] * inv_m
        var1 = ss1_ref[...] * inv_m - mean1 * mean1
        scale1 = g1_ref[...] * jax.lax.rsqrt(var1 + BN_EPS)
        shift1 = be1_ref[...] - mean1 * scale1

        s2_ref[...] = jnp.zeros_like(s2_ref)
        ss2_ref[...] = jnp.zeros_like(ss2_ref)

        @pl.loop(0, n_tiles)
        def _layer2(c):
            c0 = pl.multiple_of(c * tile_m, tile_m)
            h = jnp.maximum(h1_ref[pl.ds(c0, tile_m), :] * scale1 + shift1, 0.0)
            if needs_mask:
                rows = c * tile_m + jax.lax.broadcasted_iota(jnp.int32, h.shape, 0)
                h = jnp.where(rows < m_valid, h, 0.0)
            h2 = jnp.dot(h.astype(jnp.bfloat16), w2_ref[...],
                         preferred_element_type=jnp.float32)      # (tile_m, 64)
            s2_ref[...] += jnp.sum(h2, axis=0, keepdims=True)
            ss2_ref[...] += jnp.sum(h2 * h2, axis=0, keepdims=True)
            h2_ref[pl.ds(c0, tile_m), :] = h2

        mean2 = s2_ref[...] * inv_m
        var2 = ss2_ref[...] * inv_m - mean2 * mean2
        scale2 = g2_ref[...] * jax.lax.rsqrt(var2 + BN_EPS)
        shift2 = be2_ref[...] - mean2 * scale2

        @pl.loop(0, n_tiles)
        def _layer3(c):
            c0 = pl.multiple_of(c * tile_m, tile_m)
            h = jnp.maximum(h2_ref[pl.ds(c0, tile_m), :] * scale2 + shift2, 0.0)
            o_ref[pl.ds(c0, tile_m), :] = (
                jnp.dot(h.astype(jnp.bfloat16), w3_ref[...],
                        preferred_element_type=jnp.float32)
                + b3_ref[...]).astype(o_ref.dtype)


def _prepare_params(p):
    """Drop b1/b2 (cancelled by training-mode BN), cast matmul weights to
    bf16 (MXU-native, halves weight DMA), pad the tiny last layer to OUT_PAD
    lanes (padded columns are zero and sliced away by the wrapper)."""
    w1, _b1, g1, be1, w2, _b2, g2, be2, w3, b3 = p
    w3p = jnp.pad(w3, ((0, 0), (0, OUT_PAD - w3.shape[1]))).astype(jnp.bfloat16)
    b3p = jnp.pad(b3, ((0, 0), (0, OUT_PAD - b3.shape[1])))
    return (w1.astype(jnp.bfloat16), g1, be1,
            w2.astype(jnp.bfloat16), g2, be2,
            w3p, b3p)


def _run_extractor(x2d, prepared, out_dim):
    """Run one extractor MLP over x2d (m, 512); returns (m, out_dim) f32."""
    m, d = x2d.shape
    assert d == FEAT_IN
    if m == 0:                                   # guard 1/m (empty graph)
        return jnp.zeros((0, out_dim), jnp.float32)

    tile_m = min(_round_up(m, 16), TILE_M)       # bf16 sublane packing = 16
    n_tiles = pl.cdiv(m, tile_m)
    m_pad = n_tiles * tile_m
    needs_mask = (m % tile_m) != 0

    w1, g1, be1, w2, g2, be2, w3, b3 = prepared

    kernel = functools.partial(_mlp_bn_kernel, m_valid=m, tile_m=tile_m,
                               n_tiles=n_tiles, needs_mask=needs_mask)

    out = pl.pallas_call(
        kernel,
        out_shape=jax.ShapeDtypeStruct((m_pad, OUT_PAD), jnp.float32),
        grid_spec=pltpu.PrefetchScalarGridSpec(
            num_scalar_prefetch=0,
            grid=(n_tiles,),
            in_specs=[
                pl.BlockSpec((tile_m, FEAT_IN), lambda i: (i, 0)),   # x tile
                pl.BlockSpec((FEAT_IN, H1), lambda i: (0, 0)),       # w1 bf16
                pl.BlockSpec((1, H1), lambda i: (0, 0)),             # bn1 gamma
                pl.BlockSpec((1, H1), lambda i: (0, 0)),             # bn1 beta
                pl.BlockSpec((H1, H2), lambda i: (0, 0)),            # w2 bf16
                pl.BlockSpec((1, H2), lambda i: (0, 0)),             # bn2 gamma
                pl.BlockSpec((1, H2), lambda i: (0, 0)),             # bn2 beta
                pl.BlockSpec((H2, OUT_PAD), lambda i: (0, 0)),       # w3 padded
                pl.BlockSpec((1, OUT_PAD), lambda i: (0, 0)),        # b3 padded
            ],
            out_specs=pl.BlockSpec((m_pad, OUT_PAD), lambda i: (0, 0)),
            scratch_shapes=[
                pltpu.VMEM((m_pad, H1), jnp.float32),   # raw layer-1 acts
                pltpu.VMEM((m_pad, H2), jnp.float32),   # raw layer-2 acts
                pltpu.VMEM((1, H1), jnp.float32),       # BN1 sum
                pltpu.VMEM((1, H1), jnp.float32),       # BN1 sumsq
                pltpu.VMEM((1, H2), jnp.float32),       # BN2 sum
                pltpu.VMEM((1, H2), jnp.float32),       # BN2 sumsq
            ],
        ),
        compiler_params=pltpu.CompilerParams(
            # stats accumulate across M tiles -> sequential ("arbitrary").
            # TODO(synk): 3-phase HBM-spill variant would let this be
            # "parallel" for v7x 2-TC sharding of the big extractor.
            dimension_semantics=("arbitrary",),
            vmem_limit_bytes=_vmem_limit_bytes(),
        ),
    )(x2d, w1, g1, be1, w2, g2, be2, w3, b3)

    return out[:m, :out_dim]


@jax.jit
def scene_graph_extractor(node_latents, edge_latents, vis_params, rel_params):
    """node_latents: (B, Nn, 512), edge_latents: (B, Ne, 512).

    Returns (visible (B, Nn, 2), relative_position (B, Ne, 3)), f32.
    """
    b, nn_, d = node_latents.shape
    _, ne_, _ = edge_latents.shape
    vis = _run_extractor(node_latents.reshape(b * nn_, d),
                         _prepare_params(vis_params), 2)
    rel = _run_extractor(edge_latents.reshape(b * ne_, d),
                         _prepare_params(rel_params), 3)
    return vis.reshape(b, nn_, 2), rel.reshape(b, ne_, 3)


# ------------------------- init + pure-JAX reference -------------------------

def _init_linear(key, d_in, d_out):
    """Deterministic PyTorch-style Linear init (uniform +-1/sqrt(d_in))."""
    kw, kb = jax.random.split(key)
    bound = 1.0 / jnp.sqrt(jnp.float32(d_in))
    w = jax.random.uniform(kw, (d_in, d_out), jnp.float32, -bound, bound)
    b = jax.random.uniform(kb, (1, d_out), jnp.float32, -bound, bound)
    return w, b


def _init_mlp_params(key, dim_out):
    """dim_out: final output dim (2 for visible, 3 for relative position)."""
    k1, k2, k3 = jax.random.split(key, 3)
    w1, b1 = _init_linear(k1, FEAT_IN, H1)
    g1, be1 = jnp.ones((1, H1), jnp.float32), jnp.zeros((1, H1), jnp.float32)
    w2, b2 = _init_linear(k2, H1, H2)
    g2, be2 = jnp.ones((1, H2), jnp.float32), jnp.zeros((1, H2), jnp.float32)
    w3, b3 = _init_linear(k3, H2, dim_out)
    return (w1, b1, g1, be1, w2, b2, g2, be2, w3, b3)


def _mlp_reference(x2d, params):
    """Pure-JAX f32 reference (full module semantics, biases included)."""
    (w1, b1, g1, be1, w2, b2, g2, be2, w3, b3) = params

    def bn(h, g, be):
        mean = jnp.mean(h, axis=0, keepdims=True)
        var = jnp.mean((h - mean) ** 2, axis=0, keepdims=True)
        return (h - mean) / jnp.sqrt(var + BN_EPS) * g + be

    h = jnp.maximum(bn(x2d @ w1 + b1, g1, be1), 0.0)
    h = jnp.maximum(bn(h @ w2 + b2, g2, be2), 0.0)
    return h @ w3 + b3


if __name__ == "__main__":
    key = jax.random.PRNGKey(0)
    k_node, k_edge, k_vis, k_rel = jax.random.split(key, 4)

    # node count deliberately not a multiple of 16 (exercises the ragged-tile
    # masking path); edges larger than nodes (no cross-extractor padding now).
    B, N_NODES, N_EDGES, D = 2, 7, 24, 512
    node_latents = jax.random.normal(k_node, (B, N_NODES, D), jnp.float32)
    edge_latents = jax.random.normal(k_edge, (B, N_EDGES, D), jnp.float32)

    vis_params = _init_mlp_params(k_vis, 2)   # visible_extractor: MLP(512,[256,64,2])
    rel_params = _init_mlp_params(k_rel, 3)   # relative_position_extractor: MLP(512,[256,64,3])

    visible, relative_position = scene_graph_extractor(
        node_latents, edge_latents, vis_params, rel_params)
    jax.block_until_ready((visible, relative_position))

    # sanity check vs pure-JAX f32 reference (kernel uses bf16 MXU operands
    # with f32 accumulation, hence the loosened tolerance)
    vis_ref = _mlp_reference(node_latents.reshape(-1, D), vis_params).reshape(B, N_NODES, 2)
    rel_ref = _mlp_reference(edge_latents.reshape(-1, D), rel_params).reshape(B, N_EDGES, 3)
    assert jnp.allclose(visible, vis_ref, atol=2e-2, rtol=2e-2), \
        float(jnp.max(jnp.abs(visible - vis_ref)))
    assert jnp.allclose(relative_position, rel_ref, atol=2e-2, rtol=2e-2), \
        float(jnp.max(jnp.abs(relative_position - rel_ref)))

    print("KERNEL_OK")
</pallas_src>

<mosaic_0001>
module attributes {stable_mosaic.version = 11 : i64} {
  func.func @_mlp_bn_kernel(%arg0: i32, %arg1: memref<16x512xf32, #tpu.memory_space<vmem>>, %arg2: memref<512x256xbf16, #tpu.memory_space<vmem>>, %arg3: memref<1x256xf32, #tpu.memory_space<vmem>>, %arg4: memref<1x256xf32, #tpu.memory_space<vmem>>, %arg5: memref<256x64xbf16, #tpu.memory_space<vmem>>, %arg6: memref<1x64xf32, #tpu.memory_space<vmem>>, %arg7: memref<1x64xf32, #tpu.memory_space<vmem>>, %arg8: memref<64x8xbf16, #tpu.memory_space<vmem>>, %arg9: memref<1x8xf32, #tpu.memory_space<vmem>>, %arg10: memref<16x8xf32, #tpu.memory_space<vmem>>, %arg11: memref<16x256xf32, #tpu.memory_space<vmem>>, %arg12: memref<16x64xf32, #tpu.memory_space<vmem>>, %arg13: memref<1x256xf32, #tpu.memory_space<vmem>>, %arg14: memref<1x256xf32, #tpu.memory_space<vmem>>, %arg15: memref<1x64xf32, #tpu.memory_space<vmem>>, %arg16: memref<1x64xf32, #tpu.memory_space<vmem>>) attributes {dimension_semantics = [#tpu.dimension_semantics<arbitrary>], iteration_bounds = array<i64: 1>, scalar_prefetch = 0 : i64, scratch_operands = 6 : i64, tpu.core_type = #tpu.core_type<tc>, window_params = [{transform_indices = @transform_0, window_bounds = array<i64: 16, 512>}, {pipeline_mode = #tpu.pipeline_mode<synchronous>, transform_indices = @transform_1, window_bounds = array<i64: 512, 256>}, {pipeline_mode = #tpu.pipeline_mode<synchronous>, transform_indices = @transform_2, window_bounds = array<i64: 1, 256>}, {pipeline_mode = #tpu.pipeline_mode<synchronous>, transform_indices = @transform_3, window_bounds = array<i64: 1, 256>}, {pipeline_mode = #tpu.pipeline_mode<synchronous>, transform_indices = @transform_4, window_bounds = array<i64: 256, 64>}, {pipeline_mode = #tpu.pipeline_mode<synchronous>, transform_indices = @transform_5, window_bounds = array<i64: 1, 64>}, {pipeline_mode = #tpu.pipeline_mode<synchronous>, transform_indices = @transform_6, window_bounds = array<i64: 1, 64>}, {pipeline_mode = #tpu.pipeline_mode<synchronous>, transform_indices = @transform_7, window_bounds = array<i64: 64, 8>}, {pipeline_mode = #tpu.pipeline_mode<synchronous>, transform_indices = @transform_8, window_bounds = array<i64: 1, 8>}, {pipeline_mode = #tpu.pipeline_mode<synchronous>, transform_indices = @transform_9, window_bounds = array<i64: 16, 8>}]} {
    %c0 = arith.constant 0 : index
    %c0_0 = arith.constant 0 : index
    %0 = vector.load %arg1[%c0, %c0_0] : memref<16x512xf32, #tpu.memory_space<vmem>>, vector<16x512xf32>
    %1 = arith.truncf %0 : vector<16x512xf32> to vector<16x512xbf16>
    %c0_1 = arith.constant 0 : index
    %c0_2 = arith.constant 0 : index
    %2 = vector.load %arg2[%c0_1, %c0_2] : memref<512x256xbf16, #tpu.memory_space<vmem>>, vector<512x256xbf16>
    %cst = arith.constant dense<0.000000e+00> : vector<16x256xf32>
    %3 = tpu.matmul %1, %2, %cst {dimension_numbers = #tpu.dot_dimension_numbers<[1], [0], [0], [1], [0, 0, 1, 1], [], []>} : vector<16x512xbf16>, vector<512x256xbf16>, vector<16x256xf32> -> vector<16x256xf32>
    %c16_i32 = arith.constant 16 : i32
    %4 = arith.muli %arg0, %c16_i32 : i32
    %5 = tpu.iota {dimensions = array<i32: 0>} : vector<16x256xi32>
    %6 = vector.broadcast %4 : i32 to vector<16x256xi32>
    %7 = arith.addi %6, %5 : vector<16x256xi32>
    %c14_i32 = arith.constant 14 : i32
    %8 = vector.broadcast %c14_i32 : i32 to vector<16x256xi32>
    %9 = arith.cmpi slt, %7, %8 : vector<16x256xi32>
    %cst_3 = arith.constant 0.000000e+00 : f32
    %10 = vector.broadcast %cst_3 : f32 to vector<16x256xf32>
    %11 = arith.select %9, %3, %10 : vector<16x256xi1>, vector<16x256xf32>
    %c0_i32 = arith.constant 0 : i32
    %12 = arith.cmpi eq, %arg0, %c0_i32 : i32
    %13 = arith.extui %12 : i1 to i32
    %c0_i32_4 = arith.constant 0 : i32
    %14 = arith.cmpi ne, %13, %c0_i32_4 : i32
    scf.if %14 {
      %cst_20 = arith.constant 0.000000e+00 : f32
      %33 = vector.broadcast %cst_20 : f32 to vector<1x256xf32>
      %c0_21 = arith.constant 0 : index
      %c0_22 = arith.constant 0 : index
      %34 = vector.load %arg13[%c0_21, %c0_22] : memref<1x256xf32, #tpu.memory_space<vmem>>, vector<1x256xf32>
      tpu.vector_store %arg13[%c0_21, %c0_22], %33 {strides = array<i32>} : memref<1x256xf32, #tpu.memory_space<vmem>>, vector<1x256xf32>,
      %cst_23 = arith.constant 0.000000e+00 : f32
      %35 = vector.broadcast %cst_23 : f32 to vector<1x256xf32>
      %c0_24 = arith.constant 0 : index
      %c0_25 = arith.constant 0 : index
      %36 = vector.load %arg14[%c0_24, %c0_25] : memref<1x256xf32, #tpu.memory_space<vmem>>, vector<1x256xf32>
      tpu.vector_store %arg14[%c0_24, %c0_25], %35 {strides = array<i32>} : memref<1x256xf32, #tpu.memory_space<vmem>>, vector<1x256xf32>,
    } else {
    }
    %c0_5 = arith.constant 0 : index
    %c0_6 = arith.constant 0 : index
    %15 = vector.load %arg13[%c0_5, %c0_6] : memref<1x256xf32, #tpu.memory_space<vmem>>, vector<1x256xf32>
    %cst_7 = arith.constant dense<0.000000e+00> : vector<256xf32>
    %16 = vector.multi_reduction <add>, %11, %cst_7 [0] : vector<16x256xf32> to vector<256xf32>
    %17 = vector.shape_cast %16 : vector<256xf32> to vector<1x256xf32>
    %18 = arith.addf %15, %17 : vector<1x256xf32>
    %c0_8 = arith.constant 0 : index
    %c0_9 = arith.constant 0 : index
    %19 = vector.load %arg13[%c0_8, %c0_9] : memref<1x256xf32, #tpu.memory_space<vmem>>, vector<1x256xf32>
    tpu.vector_store %arg13[%c0_8, %c0_9], %18 {strides = array<i32>} : memref<1x256xf32, #tpu.memory_space<vmem>>, vector<1x256xf32>,
    %c0_10 = arith.constant 0 : index
    %c0_11 = arith.constant 0 : index
    %20 = vector.load %arg14[%c0_10, %c0_11] : memref<1x256xf32, #tpu.memory_space<vmem>>, vector<1x256xf32>
    %21 = arith.mulf %11, %11 : vector<16x256xf32>
    %cst_12 = arith.constant dense<0.000000e+00> : vector<256xf32>
    %22 = vector.multi_reduction <add>, %21, %cst_12 [0] : vector<16x256xf32> to vector<256xf32>
    %23 = vector.shape_cast %22 : vector<256xf32> to vector<1x256xf32>
    %24 = arith.addf %20, %23 : vector<1x256xf32>
    %c0_13 = arith.constant 0 : index
    %c0_14 = arith.constant 0 : index
    %25 = vector.load %arg14[%c0_13, %c0_14] : memref<1x256xf32, #tpu.memory_space<vmem>>, vector<1x256xf32>
    tpu.vector_store %arg14[%c0_13, %c0_14], %24 {strides = array<i32>} : memref<1x256xf32, #tpu.memory_space<vmem>>, vector<1x256xf32>,
    %c16_i32_15 = arith.constant 16 : i32
    %26 = arith.muli %arg0, %c16_i32_15 : i32
    %27 = tpu.assume_multiple %26, 16 : i32
    %28 = arith.index_cast %27 : i32 to index
    %c0_16 = arith.constant 0 : index
    %29 = vector.load %arg11[%28, %c0_16] : memref<16x256xf32, #tpu.memory_space<vmem>>, vector<16x256xf32>
    tpu.vector_store %arg11[%28, %c0_16], %11 {strides = array<i32>} : memref<16x256xf32, #tpu.memory_space<vmem>>, vector<16x256xf32>,
    %c0_i32_17 = arith.constant 0 : i32
    %30 = arith.cmpi eq, %arg0, %c0_i32_17 : i32
    %31 = arith.extui %30 : i1 to i32
    %cst_18 = arith.constant 0.0714285746 : f32
    %c0_i32_19 = arith.constant 0 : i32
    %32 = arith.cmpi ne, %31, %c0_i32_19 : i32
    scf.if %32 {
      %c0_20 = arith.constant 0 : index
      %c0_21 = arith.constant 0 : index
      %33 = vector.load %arg13[%c0_20, %c0_21] : memref<1x256xf32, #tpu.memory_space<vmem>>, vector<1x256xf32>
      %34 = vector.broadcast %cst_18 : f32 to vector<1x256xf32>
      %35 = arith.mulf %33, %34 : vector<1x256xf32>
      %c0_22 = arith.constant 0 : index
      %c0_23 = arith.constant 0 : index
      %36 = vector.load %arg14[%c0_22, %c0_23] : memref<1x256xf32, #tpu.memory_space<vmem>>, vector<1x256xf32>
      %37 = vector.broadcast %cst_18 : f32 to vector<1x256xf32>
      %38 = arith.mulf %36, %37 : vector<1x256xf32>
      %39 = arith.mulf %35, %35 : vector<1x256xf32>
      %40 = arith.subf %38, %39 : vector<1x256xf32>
      %c0_24 = arith.constant 0 : index
      %c0_25 = arith.constant 0 : index
      %41 = vector.load %arg3[%c0_24, %c0_25] : memref<1x256xf32, #tpu.memory_space<vmem>>, vector<1x256xf32>
      %cst_26 = arith.constant 9.99999974E-6 : f32
      %42 = vector.broadcast %cst_26 : f32 to vector<1x256xf32>
      %43 = arith.addf %40, %42 : vector<1x256xf32>
      %44 = math.rsqrt %43 : vector<1x256xf32>
      %45 = arith.mulf %41, %44 : vector<1x256xf32>
      %c0_27 = arith.constant 0 : index
      %c0_28 = arith.constant 0 : index
      %46 = vector.load %arg4[%c0_27, %c0_28] : memref<1x256xf32, #tpu.memory_space<vmem>>, vector<1x256xf32>
      %47 = arith.mulf %35, %45 : vector<1x256xf32>
      %48 = arith.subf %46, %47 : vector<1x256xf32>
      %cst_29 = arith.constant 0.000000e+00 : f32
      %49 = vector.broadcast %cst_29 : f32 to vector<1x64xf32>
      %c0_30 = arith.constant 0 : index
      %c0_31 = arith.constant 0 : index
      %50 = vector.load %arg15[%c0_30, %c0_31] : memref<1x64xf32, #tpu.memory_space<vmem>>, vector<1x64xf32>
      tpu.vector_store %arg15[%c0_30, %c0_31], %49 {strides = array<i32>} : memref<1x64xf32, #tpu.memory_space<vmem>>, vector<1x64xf32>,
      %cst_32 = arith.constant 0.000000e+00 : f32
      %51 = vector.broadcast %cst_32 : f32 to vector<1x64xf32>
      %c0_33 = arith.constant 0 : index
      %c0_34 = arith.constant 0 : index
      %52 = vector.load %arg16[%c0_33, %c0_34] : memref<1x64xf32, #tpu.memory_space<vmem>>, vector<1x64xf32>
      tpu.vector_store %arg16[%c0_33, %c0_34], %51 {strides = array<i32>} : memref<1x64xf32, #tpu.memory_space<vmem>>, vector<1x64xf32>,
      %c0_i32_35 = arith.constant 0 : i32
      %c1_i32 = arith.constant 1 : i32
      %53 = arith.muli %c0_i32_35, %c1_i32 : i32
      %c0_i32_36 = arith.constant 0 : i32
      %54 = arith.addi %c0_i32_36, %53 : i32
      %c16_i32_37 = arith.constant 16 : i32
      %55 = arith.muli %54, %c16_i32_37 : i32
      %56 = tpu.assume_multiple %55, 16 : i32
      %57 = arith.index_cast %56 : i32 to index
      %c0_38 = arith.constant 0 : index
      %58 = vector.load %arg11[%57, %c0_38] : memref<16x256xf32, #tpu.memory_space<vmem>>, vector<16x256xf32>
      %59 = vector.broadcast %45 : vector<1x256xf32> to vector<16x256xf32>
      %60 = arith.mulf %58, %59 : vector<16x256xf32>
      %61 = vector.broadcast %48 : vector<1x256xf32> to vector<16x256xf32>
      %62 = arith.addf %60, %61 : vector<16x256xf32>
      %cst_39 = arith.constant 0.000000e+00 : f32
      %63 = vector.broadcast %cst_39 : f32 to vector<16x256xf32>
      %64 = arith.maximumf %62, %63 : vector<16x256xf32>
      %c16_i32_40 = arith.constant 16 : i32
      %65 = arith.muli %54, %c16_i32_40 : i32
      %66 = tpu.iota {dimensions = array<i32: 0>} : vector<16x256xi32>
      %67 = vector.broadcast %65 : i32 to vector<16x256xi32>
      %68 = arith.addi %67, %66 : vector<16x256xi32>
      %c14_i32_41 = arith.constant 14 : i32
      %69 = vector.broadcast %c14_i32_41 : i32 to vector<16x256xi32>
      %70 = arith.cmpi slt, %68, %69 : vector<16x256xi32>
      %cst_42 = arith.constant 0.000000e+00 : f32
      %71 = vector.broadcast %cst_42 : f32 to vector<16x256xf32>
      %72 = arith.select %70, %64, %71 : vector<16x256xi1>, vector<16x256xf32>
      %73 = arith.truncf %72 : vector<16x256xf32> to vector<16x256xbf16>
      %c0_43 = arith.constant 0 : index
      %c0_44 = arith.constant 0 : index
      %74 = vector.load %arg5[%c0_43, %c0_44] : memref<256x64xbf16, #tpu.memory_space<vmem>>, vector<256x64xbf16>
      %cst_45 = arith.constant dense<0.000000e+00> : vector<16x64xf32>
      %75 = tpu.matmul %73, %74, %cst_45 {dimension_numbers = #tpu.dot_dimension_numbers<[1], [0], [0], [1], [0, 0, 1, 1], [], []>} : vector<16x256xbf16>, vector<256x64xbf16>, vector<16x64xf32> -> vector<16x64xf32>
      %c0_46 = arith.constant 0 : index
      %c0_47 = arith.constant 0 : index
      %76 = vector.load %arg15[%c0_46, %c0_47] : memref<1x64xf32, #tpu.memory_space<vmem>>, vector<1x64xf32>
      %cst_48 = arith.constant dense<0.000000e+00> : vector<64xf32>
      %77 = vector.multi_reduction <add>, %75, %cst_48 [0] : vector<16x64xf32> to vector<64xf32>
      %78 = vector.shape_cast %77 : vector<64xf32> to vector<1x64xf32>
      %79 = arith.addf %76, %78 : vector<1x64xf32>
      %c0_49 = arith.constant 0 : index
      %c0_50 = arith.constant 0 : index
      %80 = vector.load %arg15[%c0_49, %c0_50] : memref<1x64xf32, #tpu.memory_space<vmem>>, vector<1x64xf32>
      tpu.vector_store %arg15[%c0_49, %c0_50], %79 {strides = array<i32>} : memref<1x64xf32, #tpu.memory_space<vmem>>, vector<1x64xf32>,
      %c0_51 = arith.constant 0 : index
      %c0_52 = arith.constant 0 : index
      %81 = vector.load %arg16[%c0_51, %c0_52] : memref<1x64xf32, #tpu.memory_space<vmem>>, vector<1x64xf32>
      %82 = arith.mulf %75, %75 : vector<16x64xf32>
      %cst_53 = arith.constant dense<0.000000e+00> : vector<64xf32>
      %83 = vector.multi_reduction <add>, %82, %cst_53 [0] : vector<16x64xf32> to vector<64xf32>
      %84 = vector.shape_cast %83 : vector<64xf32> to vector<1x64xf32>
      %85 = arith.addf %81, %84 : vector<1x64xf32>
      %c0_54 = arith.constant 0 : index
      %c0_55 = arith.constant 0 : index
      %86 = vector.load %arg16[%c0_54, %c0_55] : memref<1x64xf32, #tpu.memory_space<vmem>>, vector<1x64xf32>
      tpu.vector_store %arg16[%c0_54, %c0_55], %85 {strides = array<i32>} : memref<1x64xf32, #tpu.memory_space<vmem>>, vector<1x64xf32>,
      %87 = arith.index_cast %56 : i32 to index
      %c0_56 = arith.constant 0 : index
      %88 = vector.load %arg12[%87, %c0_56] : memref<16x64xf32, #tpu.memory_space<vmem>>, vector<16x64xf32>
      tpu.vector_store %arg12[%87, %c0_56], %75 {strides = array<i32>} : memref<16x64xf32, #tpu.memory_space<vmem>>, vector<16x64xf32>,
      %c1_i32_57 = arith.constant 1 : i32
      %c0_58 = arith.constant 0 : index
      %c0_59 = arith.constant 0 : index
      %89 = vector.load %arg15[%c0_58, %c0_59] : memref<1x64xf32, #tpu.memory_space<vmem>>, vector<1x64xf32>
      %90 = vector.broadcast %cst_18 : f32 to vector<1x64xf32>
      %91 = arith.mulf %89, %90 : vector<1x64xf32>
      %c0_60 = arith.constant 0 : index
      %c0_61 = arith.constant 0 : index
      %92 = vector.load %arg16[%c0_60, %c0_61] : memref<1x64xf32, #tpu.memory_space<vmem>>, vector<1x64xf32>
      %93 = vector.broadcast %cst_18 : f32 to vector<1x64xf32>
      %94 = arith.mulf %92, %93 : vector<1x64xf32>
      %95 = arith.mulf %91, %91 : vector<1x64xf32>
      %96 = arith.subf %94, %95 : vector<1x64xf32>
      %c0_62 = arith.constant 0 : index
      %c0_63 = arith.constant 0 : index
      %97 = vector.load %arg6[%c0_62, %c0_63] : memref<1x64xf32, #tpu.memory_space<vmem>>, vector<1x64xf32>
      %cst_64 = arith.constant 9.99999974E-6 : f32
      %98 = vector.broadcast %cst_64 : f32 to vector<1x64xf32>
      %99 = arith.addf %96, %98 : vector<1x64xf32>
      %100 = math.rsqrt %99 : vector<1x64xf32>
      %101 = arith.mulf %97, %100 : vector<1x64xf32>
      %c0_65 = arith.constant 0 : index
      %c0_66 = arith.constant 0 : index
      %102 = vector.load %arg7[%c0_65, %c0_66] : memref<1x64xf32, #tpu.memory_space<vmem>>, vector<1x64xf32>
      %103 = arith.mulf %91, %101 : vector<1x64xf32>
      %104 = arith.subf %102, %103 : vector<1x64xf32>
      %c0_i32_67 = arith.constant 0 : i32
      %c1_i32_68 = arith.constant 1 : i32
      %105 = arith.muli %c0_i32_67, %c1_i32_68 : i32
      %c0_i32_69 = arith.constant 0 : i32
      %106 = arith.addi %c0_i32_69, %105 : i32
      %c16_i32_70 = arith.constant 16 : i32
      %107 = arith.muli %106, %c16_i32_70 : i32
      %108 = tpu.assume_multiple %107, 16 : i32
      %109 = arith.index_cast %108 : i32 to index
      %c0_71 = arith.constant 0 : index
      %110 = vector.load %arg12[%109, %c0_71] : memref<16x64xf32, #tpu.memory_space<vmem>>, vector<16x64xf32>
      %111 = vector.broadcast %101 : vector<1x64xf32> to vector<16x64xf32>
      %112 = arith.mulf %110, %111 : vector<16x64xf32>
      %113 = vector.broadcast %104 : vector<1x64xf32> to vector<16x64xf32>
      %114 = arith.addf %112, %113 : vector<16x64xf32>
      %cst_72 = arith.constant 0.000000e+00 : f32
      %115 = vector.broadcast %cst_72 : f32 to vector<16x64xf32>
      %116 = arith.maximumf %114, %115 : vector<16x64xf32>
      %117 = arith.truncf %116 : vector<16x64xf32> to vector<16x64xbf16>
      %c0_73 = arith.constant 0 : index
      %c0_74 = arith.constant 0 : index
      %118 = vector.load %arg8[%c0_73, %c0_74] : memref<64x8xbf16, #tpu.memory_space<vmem>>, vector<64x8xbf16>
      %cst_75 = arith.constant dense<0.000000e+00> : vector<16x8xf32>
      %119 = tpu.matmul %117, %118, %cst_75 {dimension_numbers = #tpu.dot_dimension_numbers<[1], [0], [0], [1], [0, 0, 1, 1], [], []>} : vector<16x64xbf16>, vector<64x8xbf16>, vector<16x8xf32> -> vector<16x8xf32>
      %c0_76 = arith.constant 0 : index
      %c0_77 = arith.constant 0 : index
      %120 = vector.load %arg9[%c0_76, %c0_77] : memref<1x8xf32, #tpu.memory_space<vmem>>, vector<1x8xf32>
      %121 = vector.broadcast %120 : vector<1x8xf32> to vector<16x8xf32>
      %122 = arith.addf %119, %121 : vector<16x8xf32>
      %123 = arith.index_cast %108 : i32 to index
      %c0_78 = arith.constant 0 : index
      %124 = vector.load %arg10[%123, %c0_78] : memref<16x8xf32, #tpu.memory_space<vmem>>, vector<16x8xf32>
      tpu.vector_store %arg10[%123, %c0_78], %122 {strides = array<i32>} : memref<16x8xf32, #tpu.memory_space<vmem>>, vector<16x8xf32>,
      %c1_i32_79 = arith.constant 1 : i32
    } else {
    }
    return
  }
  func.func @transform_0(%arg0: i32) -> (i32, i32) {
    %c0_i32 = arith.constant 0 : i32
    %c0_i32_0 = arith.constant 0 : i32
    return %arg0, %c0_i32 : i32, i32
  }
  func.func @transform_1(%arg0: i32) -> (i32, i32) {
    %c0_i32 = arith.constant 0 : i32
    %c0_i32_0 = arith.constant 0 : i32
    %c0_i32_1 = arith.constant 0 : i32
    return %c0_i32, %c0_i32_0 : i32, i32
  }
  func.func @transform_2(%arg0: i32) -> (i32, i32) {
    %c0_i32 = arith.constant 0 : i32
    %c0_i32_0 = arith.constant 0 : i32
    %c0_i32_1 = arith.constant 0 : i32
    return %c0_i32, %c0_i32_0 : i32, i32
  }
  func.func @transform_3(%arg0: i32) -> (i32, i32) {
    %c0_i32 = arith.constant 0 : i32
    %c0_i32_0 = arith.constant 0 : i32
    %c0_i32_1 = arith.constant 0 : i32
    return %c0_i32, %c0_i32_0 : i32, i32
  }
  func.func @transform_4(%arg0: i32) -> (i32, i32) {
    %c0_i32 = arith.constant 0 : i32
    %c0_i32_0 = arith.constant 0 : i32
    %c0_i32_1 = arith.constant 0 : i32
    return %c0_i32, %c0_i32_0 : i32, i32
  }
  func.func @transform_5(%arg0: i32) -> (i32, i32) {
    %c0_i32 = arith.constant 0 : i32
    %c0_i32_0 = arith.constant 0 : i32
    %c0_i32_1 = arith.constant 0 : i32
    return %c0_i32, %c0_i32_0 : i32, i32
  }
  func.func @transform_6(%arg0: i32) -> (i32, i32) {
    %c0_i32 = arith.constant 0 : i32
    %c0_i32_0 = arith.constant 0 : i32
    %c0_i32_1 = arith.constant 0 : i32
    return %c0_i32, %c0_i32_0 : i32, i32
  }
  func.func @transform_7(%arg0: i32) -> (i32, i32) {
    %c0_i32 = arith.constant 0 : i32
    %c0_i32_0 = arith.constant 0 : i32
    %c0_i32_1 = arith.constant 0 : i32
    return %c0_i32, %c0_i32_0 : i32, i32
  }
  func.func @transform_8(%arg0: i32) -> (i32, i32) {
    %c0_i32 = arith.constant 0 : i32
    %c0_i32_0 = arith.constant 0 : i32
    %c0_i32_1 = arith.constant 0 : i32
    return %c0_i32, %c0_i32_0 : i32, i32
  }
  func.func @transform_9(%arg0: i32) -> (i32, i32) {
    %c0_i32 = arith.constant 0 : i32
    %c0_i32_0 = arith.constant 0 : i32
    %c0_i32_1 = arith.constant 0 : i32
    return %c0_i32, %c0_i32_0 : i32, i32
  }
}

module attributes {stable_mosaic.version = 11 : i64} {
  func.func @_mlp_bn_kernel(%arg0: i32, %arg1: memref<48x512xf32, #tpu.memory_space<vmem>>, %arg2: memref<512x256xbf16, #tpu.memory_space<vmem>>, %arg3: memref<1x256xf32, #tpu.memory_space<vmem>>, %arg4: memref<1x256xf32, #tpu.memory_space<vmem>>, %arg5: memref<256x64xbf16, #tpu.memory_space<vmem>>, %arg6: memref<1x64xf32, #tpu.memory_space<vmem>>, %arg7: memref<1x64xf32, #tpu.memory_space<vmem>>, %arg8: memref<64x8xbf16, #tpu.memory_space<vmem>>, %arg9: memref<1x8xf32, #tpu.memory_space<vmem>>, %arg10: memref<48x8xf32, #tpu.memory_space<vmem>>, %arg11: memref<48x256xf32, #tpu.memory_space<vmem>>, %arg12: memref<48x64xf32, #tpu.memory_space<vmem>>, %arg13: memref<1x256xf32, #tpu.memory_space<vmem>>, %arg14: memref<1x256xf32, #tpu.memory_space<vmem>>, %arg15: memref<1x64xf32, #tpu.memory_space<vmem>>, %arg16: memref<1x64xf32, #tpu.memory_space<vmem>>) attributes {dimension_semantics = [#tpu.dimension_semantics<arbitrary>], iteration_bounds = array<i64: 1>, scalar_prefetch = 0 : i64, scratch_operands = 6 : i64, tpu.core_type = #tpu.core_type<tc>, window_params = [{transform_indices = @transform_0, window_bounds = array<i64: 48, 512>}, {pipeline_mode = #tpu.pipeline_mode<synchronous>, transform_indices = @transform_1, window_bounds = array<i64: 512, 256>}, {pipeline_mode = #tpu.pipeline_mode<synchronous>, transform_indices = @transform_2, window_bounds = array<i64: 1, 256>}, {pipeline_mode = #tpu.pipeline_mode<synchronous>, transform_indices = @transform_3, window_bounds = array<i64: 1, 256>}, {pipeline_mode = #tpu.pipeline_mode<synchronous>, transform_indices = @transform_4, window_bounds = array<i64: 256, 64>}, {pipeline_mode = #tpu.pipeline_mode<synchronous>, transform_indices = @transform_5, window_bounds = array<i64: 1, 64>}, {pipeline_mode = #tpu.pipeline_mode<synchronous>, transform_indices = @transform_6, window_bounds = array<i64: 1, 64>}, {pipeline_mode = #tpu.pipeline_mode<synchronous>, transform_indices = @transform_7, window_bounds = array<i64: 64, 8>}, {pipeline_mode = #tpu.pipeline_mode<synchronous>, transform_indices = @transform_8, window_bounds = array<i64: 1, 8>}, {pipeline_mode = #tpu.pipeline_mode<synchronous>, transform_indices = @transform_9, window_bounds = array<i64: 48, 8>}]} {
    %c0 = arith.constant 0 : index
    %c0_0 = arith.constant 0 : index
    %0 = vector.load %arg1[%c0, %c0_0] : memref<48x512xf32, #tpu.memory_space<vmem>>, vector<48x512xf32>
    %1 = arith.truncf %0 : vector<48x512xf32> to vector<48x512xbf16>
    %c0_1 = arith.constant 0 : index
    %c0_2 = arith.constant 0 : index
    %2 = vector.load %arg2[%c0_1, %c0_2] : memref<512x256xbf16, #tpu.memory_space<vmem>>, vector<512x256xbf16>
    %cst = arith.constant dense<0.000000e+00> : vector<48x256xf32>
    %3 = tpu.matmul %1, %2, %cst {dimension_numbers = #tpu.dot_dimension_numbers<[1], [0], [0], [1], [0, 0, 1, 1], [], []>} : vector<48x512xbf16>, vector<512x256xbf16>, vector<48x256xf32> -> vector<48x256xf32>
    %c0_i32 = arith.constant 0 : i32
    %4 = arith.cmpi eq, %arg0, %c0_i32 : i32
    %5 = arith.extui %4 : i1 to i32
    %c0_i32_3 = arith.constant 0 : i32
    %6 = arith.cmpi ne, %5, %c0_i32_3 : i32
    scf.if %6 {
      %cst_18 = arith.constant 0.000000e+00 : f32
      %25 = vector.broadcast %cst_18 : f32 to vector<1x256xf32>
      %c0_19 = arith.constant 0 : index
      %c0_20 = arith.constant 0 : index
      %26 = vector.load %arg13[%c0_19, %c0_20] : memref<1x256xf32, #tpu.memory_space<vmem>>, vector<1x256xf32>
      tpu.vector_store %arg13[%c0_19, %c0_20], %25 {strides = array<i32>} : memref<1x256xf32, #tpu.memory_space<vmem>>, vector<1x256xf32>,
      %cst_21 = arith.constant 0.000000e+00 : f32
      %27 = vector.broadcast %cst_21 : f32 to vector<1x256xf32>
      %c0_22 = arith.constant 0 : index
      %c0_23 = arith.constant 0 : index
      %28 = vector.load %arg14[%c0_22, %c0_23] : memref<1x256xf32, #tpu.memory_space<vmem>>, vector<1x256xf32>
      tpu.vector_store %arg14[%c0_22, %c0_23], %27 {strides = array<i32>} : memref<1x256xf32, #tpu.memory_space<vmem>>, vector<1x256xf32>,
    } else {
    }
    %c0_4 = arith.constant 0 : index
    %c0_5 = arith.constant 0 : index
    %7 = vector.load %arg13[%c0_4, %c0_5] : memref<1x256xf32, #tpu.memory_space<vmem>>, vector<1x256xf32>
    %cst_6 = arith.constant dense<0.000000e+00> : vector<256xf32>
    %8 = vector.multi_reduction <add>, %3, %cst_6 [0] : vector<48x256xf32> to vector<256xf32>
    %9 = vector.shape_cast %8 : vector<256xf32> to vector<1x256xf32>
    %10 = arith.addf %7, %9 : vector<1x256xf32>
    %c0_7 = arith.constant 0 : index
    %c0_8 = arith.constant 0 : index
    %11 = vector.load %arg13[%c0_7, %c0_8] : memref<1x256xf32, #tpu.memory_space<vmem>>, vector<1x256xf32>
    tpu.vector_store %arg13[%c0_7, %c0_8], %10 {strides = array<i32>} : memref<1x256xf32, #tpu.memory_space<vmem>>, vector<1x256xf32>,
    %c0_9 = arith.constant 0 : index
    %c0_10 = arith.constant 0 : index
    %12 = vector.load %arg14[%c0_9, %c0_10] : memref<1x256xf32, #tpu.memory_space<vmem>>, vector<1x256xf32>
    %13 = arith.mulf %3, %3 : vector<48x256xf32>
    %cst_11 = arith.constant dense<0.000000e+00> : vector<256xf32>
    %14 = vector.multi_reduction <add>, %13, %cst_11 [0] : vector<48x256xf32> to vector<256xf32>
    %15 = vector.shape_cast %14 : vector<256xf32> to vector<1x256xf32>
    %16 = arith.addf %12, %15 : vector<1x256xf32>
    %c0_12 = arith.constant 0 : index
    %c0_13 = arith.constant 0 : index
    %17 = vector.load %arg14[%c0_12, %c0_13] : memref<1x256xf32, #tpu.memory_space<vmem>>, vector<1x256xf32>
    tpu.vector_store %arg14[%c0_12, %c0_13], %16 {strides = array<i32>} : memref<1x256xf32, #tpu.memory_space<vmem>>, vector<1x256xf32>,
    %c48_i32 = arith.constant 48 : i32
    %18 = arith.muli %arg0, %c48_i32 : i32
    %19 = tpu.assume_multiple %18, 48 : i32
    %20 = arith.index_cast %19 : i32 to index
    %c0_14 = arith.constant 0 : index
    %21 = vector.load %arg11[%20, %c0_14] : memref<48x256xf32, #tpu.memory_space<vmem>>, vector<48x256xf32>
    tpu.vector_store %arg11[%20, %c0_14], %3 {strides = array<i32>} : memref<48x256xf32, #tpu.memory_space<vmem>>, vector<48x256xf32>,
    %c0_i32_15 = arith.constant 0 : i32
    %22 = arith.cmpi eq, %arg0, %c0_i32_15 : i32
    %23 = arith.extui %22 : i1 to i32
    %cst_16 = arith.constant 0.020833334 : f32
    %c0_i32_17 = arith.constant 0 : i32
    %24 = arith.cmpi ne, %23, %c0_i32_17 : i32
    scf.if %24 {
      %c0_18 = arith.constant 0 : index
      %c0_19 = arith.constant 0 : index
      %25 = vector.load %arg13[%c0_18, %c0_19] : memref<1x256xf32, #tpu.memory_space<vmem>>, vector<1x256xf32>
      %26 = vector.broadcast %cst_16 : f32 to vector<1x256xf32>
      %27 = arith.mulf %25, %26 : vector<1x256xf32>
      %c0_20 = arith.constant 0 : index
      %c0_21 = arith.constant 0 : index
      %28 = vector.load %arg14[%c0_20, %c0_21] : memref<1x256xf32, #tpu.memory_space<vmem>>, vector<1x256xf32>
      %29 = vector.broadcast %cst_16 : f32 to vector<1x256xf32>
      %30 = arith.mulf %28, %29 : vector<1x256xf32>
      %31 = arith.mulf %27, %27 : vector<1x256xf32>
      %32 = arith.subf %30, %31 : vector<1x256xf32>
      %c0_22 = arith.constant 0 : index
      %c0_23 = arith.constant 0 : index
      %33 = vector.load %arg3[%c0_22, %c0_23] : memref<1x256xf32, #tpu.memory_space<vmem>>, vector<1x256xf32>
      %cst_24 = arith.constant 9.99999974E-6 : f32
      %34 = vector.broadcast %cst_24 : f32 to vector<1x256xf32>
      %35 = arith.addf %32, %34 : vector<1x256xf32>
      %36 = math.rsqrt %35 : vector<1x256xf32>
      %37 = arith.mulf %33, %36 : vector<1x256xf32>
      %c0_25 = arith.constant 0 : index
      %c0_26 = arith.constant 0 : index
      %38 = vector.load %arg4[%c0_25, %c0_26] : memref<1x256xf32, #tpu.memory_space<vmem>>, vector<1x256xf32>
      %39 = arith.mulf %27, %37 : vector<1x256xf32>
      %40 = arith.subf %38, %39 : vector<1x256xf32>
      %cst_27 = arith.constant 0.000000e+00 : f32
      %41 = vector.broadcast %cst_27 : f32 to vector<1x64xf32>
      %c0_28 = arith.constant 0 : index
      %c0_29 = arith.constant 0 : index
      %42 = vector.load %arg15[%c0_28, %c0_29] : memref<1x64xf32, #tpu.memory_space<vmem>>, vector<1x64xf32>
      tpu.vector_store %arg15[%c0_28, %c0_29], %41 {strides = array<i32>} : memref<1x64xf32, #tpu.memory_space<vmem>>, vector<1x64xf32>,
      %cst_30 = arith.constant 0.000000e+00 : f32
      %43 = vector.broadcast %cst_30 : f32 to vector<1x64xf32>
      %c0_31 = arith.constant 0 : index
      %c0_32 = arith.constant 0 : index
      %44 = vector.load %arg16[%c0_31, %c0_32] : memref<1x64xf32, #tpu.memory_space<vmem>>, vector<1x64xf32>
      tpu.vector_store %arg16[%c0_31, %c0_32], %43 {strides = array<i32>} : memref<1x64xf32, #tpu.memory_space<vmem>>, vector<1x64xf32>,
      %c0_i32_33 = arith.constant 0 : i32
      %c1_i32 = arith.constant 1 : i32
      %45 = arith.muli %c0_i32_33, %c1_i32 : i32
      %c0_i32_34 = arith.constant 0 : i32
      %46 = arith.addi %c0_i32_34, %45 : i32
      %c48_i32_35 = arith.constant 48 : i32
      %47 = arith.muli %46, %c48_i32_35 : i32
      %48 = tpu.assume_multiple %47, 48 : i32
      %49 = arith.index_cast %48 : i32 to index
      %c0_36 = arith.constant 0 : index
      %50 = vector.load %arg11[%49, %c0_36] : memref<48x256xf32, #tpu.memory_space<vmem>>, vector<48x256xf32>
      %51 = vector.broadcast %37 : vector<1x256xf32> to vector<48x256xf32>
      %52 = arith.mulf %50, %51 : vector<48x256xf32>
      %53 = vector.broadcast %40 : vector<1x256xf32> to vector<48x256xf32>
      %54 = arith.addf %52, %53 : vector<48x256xf32>
      %cst_37 = arith.constant 0.000000e+00 : f32
      %55 = vector.broadcast %cst_37 : f32 to vector<48x256xf32>
      %56 = arith.maximumf %54, %55 : vector<48x256xf32>
      %57 = arith.truncf %56 : vector<48x256xf32> to vector<48x256xbf16>
      %c0_38 = arith.constant 0 : index
      %c0_39 = arith.constant 0 : index
      %58 = vector.load %arg5[%c0_38, %c0_39] : memref<256x64xbf16, #tpu.memory_space<vmem>>, vector<256x64xbf16>
      %cst_40 = arith.constant dense<0.000000e+00> : vector<48x64xf32>
      %59 = tpu.matmul %57, %58, %cst_40 {dimension_numbers = #tpu.dot_dimension_numbers<[1], [0], [0], [1], [0, 0, 1, 1], [], []>} : vector<48x256xbf16>, vector<256x64xbf16>, vector<48x64xf32> -> vector<48x64xf32>
      %c0_41 = arith.constant 0 : index
      %c0_42 = arith.constant 0 : index
      %60 = vector.load %arg15[%c0_41, %c0_42] : memref<1x64xf32, #tpu.memory_space<vmem>>, vector<1x64xf32>
      %cst_43 = arith.constant dense<0.000000e+00> : vector<64xf32>
      %61 = vector.multi_reduction <add>, %59, %cst_43 [0] : vector<48x64xf32> to vector<64xf32>
      %62 = vector.shape_cast %61 : vector<64xf32> to vector<1x64xf32>
      %63 = arith.addf %60, %62 : vector<1x64xf32>
      %c0_44 = arith.constant 0 : index
      %c0_45 = arith.constant 0 : index
      %64 = vector.load %arg15[%c0_44, %c0_45] : memref<1x64xf32, #tpu.memory_space<vmem>>, vector<1x64xf32>
      tpu.vector_store %arg15[%c0_44, %c0_45], %63 {strides = array<i32>} : memref<1x64xf32, #tpu.memory_space<vmem>>, vector<1x64xf32>,
      %c0_46 = arith.constant 0 : index
      %c0_47 = arith.constant 0 : index
      %65 = vector.load %arg16[%c0_46, %c0_47] : memref<1x64xf32, #tpu.memory_space<vmem>>, vector<1x64xf32>
      %66 = arith.mulf %59, %59 : vector<48x64xf32>
      %cst_48 = arith.constant dense<0.000000e+00> : vector<64xf32>
      %67 = vector.multi_reduction <add>, %66, %cst_48 [0] : vector<48x64xf32> to vector<64xf32>
      %68 = vector.shape_cast %67 : vector<64xf32> to vector<1x64xf32>
      %69 = arith.addf %65, %68 : vector<1x64xf32>
      %c0_49 = arith.constant 0 : index
      %c0_50 = arith.constant 0 : index
      %70 = vector.load %arg16[%c0_49, %c0_50] : memref<1x64xf32, #tpu.memory_space<vmem>>, vector<1x64xf32>
      tpu.vector_store %arg16[%c0_49, %c0_50], %69 {strides = array<i32>} : memref<1x64xf32, #tpu.memory_space<vmem>>, vector<1x64xf32>,
      %71 = arith.index_cast %48 : i32 to index
      %c0_51 = arith.constant 0 : index
      %72 = vector.load %arg12[%71, %c0_51] : memref<48x64xf32, #tpu.memory_space<vmem>>, vector<48x64xf32>
      tpu.vector_store %arg12[%71, %c0_51], %59 {strides = array<i32>} : memref<48x64xf32, #tpu.memory_space<vmem>>, vector<48x64xf32>,
      %c1_i32_52 = arith.constant 1 : i32
      %c0_53 = arith.constant 0 : index
      %c0_54 = arith.constant 0 : index
      %73 = vector.load %arg15[%c0_53, %c0_54] : memref<1x64xf32, #tpu.memory_space<vmem>>, vector<1x64xf32>
      %74 = vector.broadcast %cst_16 : f32 to vector<1x64xf32>
      %75 = arith.mulf %73, %74 : vector<1x64xf32>
      %c0_55 = arith.constant 0 : index
      %c0_56 = arith.constant 0 : index
      %76 = vector.load %arg16[%c0_55, %c0_56] : memref<1x64xf32, #tpu.memory_space<vmem>>, vector<1x64xf32>
      %77 = vector.broadcast %cst_16 : f32 to vector<1x64xf32>
      %78 = arith.mulf %76, %77 : vector<1x64xf32>
      %79 = arith.mulf %75, %75 : vector<1x64xf32>
      %80 = arith.subf %78, %79 : vector<1x64xf32>
      %c0_57 = arith.constant 0 : index
      %c0_58 = arith.constant 0 : index
      %81 = vector.load %arg6[%c0_57, %c0_58] : memref<1x64xf32, #tpu.memory_space<vmem>>, vector<1x64xf32>
      %cst_59 = arith.constant 9.99999974E-6 : f32
      %82 = vector.broadcast %cst_59 : f32 to vector<1x64xf32>
      %83 = arith.addf %80, %82 : vector<1x64xf32>
      %84 = math.rsqrt %83 : vector<1x64xf32>
      %85 = arith.mulf %81, %84 : vector<1x64xf32>
      %c0_60 = arith.constant 0 : index
      %c0_61 = arith.constant 0 : index
      %86 = vector.load %arg7[%c0_60, %c0_61] : memref<1x64xf32, #tpu.memory_space<vmem>>, vector<1x64xf32>
      %87 = arith.mulf %75, %85 : vector<1x64xf32>
      %88 = arith.subf %86, %87 : vector<1x64xf32>
      %c0_i32_62 = arith.constant 0 : i32
      %c1_i32_63 = arith.constant 1 : i32
      %89 = arith.muli %c0_i32_62, %c1_i32_63 : i32
      %c0_i32_64 = arith.constant 0 : i32
      %90 = arith.addi %c0_i32_64, %89 : i32
      %c48_i32_65 = arith.constant 48 : i32
      %91 = arith.muli %90, %c48_i32_65 : i32
      %92 = tpu.assume_multiple %91, 48 : i32
      %93 = arith.index_cast %92 : i32 to index
      %c0_66 = arith.constant 0 : index
      %94 = vector.load %arg12[%93, %c0_66] : memref<48x64xf32, #tpu.memory_space<vmem>>, vector<48x64xf32>
      %95 = vector.broadcast %85 : vector<1x64xf32> to vector<48x64xf32>
      %96 = arith.mulf %94, %95 : vector<48x64xf32>
      %97 = vector.broadcast %88 : vector<1x64xf32> to vector<48x64xf32>
      %98 = arith.addf %96, %97 : vector<48x64xf32>
      %cst_67 = arith.constant 0.000000e+00 : f32
      %99 = vector.broadcast %cst_67 : f32 to vector<48x64xf32>
      %100 = arith.maximumf %98, %99 : vector<48x64xf32>
      %101 = arith.truncf %100 : vector<48x64xf32> to vector<48x64xbf16>
      %c0_68 = arith.constant 0 : index
      %c0_69 = arith.constant 0 : index
      %102 = vector.load %arg8[%c0_68, %c0_69] : memref<64x8xbf16, #tpu.memory_space<vmem>>, vector<64x8xbf16>
      %cst_70 = arith.constant dense<0.000000e+00> : vector<48x8xf32>
      %103 = tpu.matmul %101, %102, %cst_70 {dimension_numbers = #tpu.dot_dimension_numbers<[1], [0], [0], [1], [0, 0, 1, 1], [], []>} : vector<48x64xbf16>, vector<64x8xbf16>, vector<48x8xf32> -> vector<48x8xf32>
      %c0_71 = arith.constant 0 : index
      %c0_72 = arith.constant 0 : index
      %104 = vector.load %arg9[%c0_71, %c0_72] : memref<1x8xf32, #tpu.memory_space<vmem>>, vector<1x8xf32>
      %105 = vector.broadcast %104 : vector<1x8xf32> to vector<48x8xf32>
      %106 = arith.addf %103, %105 : vector<48x8xf32>
      %107 = arith.index_cast %92 : i32 to index
      %c0_73 = arith.constant 0 : index
      %108 = vector.load %arg10[%107, %c0_73] : memref<48x8xf32, #tpu.memory_space<vmem>>, vector<48x8xf32>
      tpu.vector_store %arg10[%107, %c0_73], %106 {strides = array<i32>} : memref<48x8xf32, #tpu.memory_space<vmem>>, vector<48x8xf32>,
      %c1_i32_74 = arith.constant 1 : i32
    } else {
    }
    return
  }
  func.func @transform_0(%arg0: i32) -> (i32, i32) {
    %c0_i32 = arith.constant 0 : i32
    %c0_i32_0 = arith.constant 0 : i32
    return %arg0, %c0_i32 : i32, i32
  }
  func.func @transform_1(%arg0: i32) -> (i32, i32) {
    %c0_i32 = arith.constant 0 : i32
    %c0_i32_0 = arith.constant 0 : i32
    %c0_i32_1 = arith.constant 0 : i32
    return %c0_i32, %c0_i32_0 : i32, i32
  }
  func.func @transform_2(%arg0: i32) -> (i32, i32) {
    %c0_i32 = arith.constant 0 : i32
    %c0_i32_0 = arith.constant 0 : i32
    %c0_i32_1 = arith.constant 0 : i32
    return %c0_i32, %c0_i32_0 : i32, i32
  }
  func.func @transform_3(%arg0: i32) -> (i32, i32) {
    %c0_i32 = arith.constant 0 : i32
    %c0_i32_0 = arith.constant 0 : i32
    %c0_i32_1 = arith.constant 0 : i32
    return %c0_i32, %c0_i32_0 : i32, i32
  }
  func.func @transform_4(%arg0: i32) -> (i32, i32) {
    %c0_i32 = arith.constant 0 : i32
    %c0_i32_0 = arith.constant 0 : i32
    %c0_i32_1 = arith.constant 0 : i32
    return %c0_i32, %c0_i32_0 : i32, i32
  }
  func.func @transform_5(%arg0: i32) -> (i32, i32) {
    %c0_i32 = arith.constant 0 : i32
    %c0_i32_0 = arith.constant 0 : i32
    %c0_i32_1 = arith.constant 0 : i32
    return %c0_i32, %c0_i32_0 : i32, i32
  }
  func.func @transform_6(%arg0: i32) -> (i32, i32) {
    %c0_i32 = arith.constant 0 : i32
    %c0_i32_0 = arith.constant 0 : i32
    %c0_i32_1 = arith.constant 0 : i32
    return %c0_i32, %c0_i32_0 : i32, i32
  }
  func.func @transform_7(%arg0: i32) -> (i32, i32) {
    %c0_i32 = arith.constant 0 : i32
    %c0_i32_0 = arith.constant 0 : i32
    %c0_i32_1 = arith.constant 0 : i32
    return %c0_i32, %c0_i32_0 : i32, i32
  }
  func.func @transform_8(%arg0: i32) -> (i32, i32) {
    %c0_i32 = arith.constant 0 : i32
    %c0_i32_0 = arith.constant 0 : i32
    %c0_i32_1 = arith.constant 0 : i32
    return %c0_i32, %c0_i32_0 : i32, i32
  }
  func.func @transform_9(%arg0: i32) -> (i32, i32) {
    %c0_i32 = arith.constant 0 : i32
    %c0_i32_0 = arith.constant 0 : i32
    %c0_i32_1 = arith.constant 0 : i32
    return %c0_i32, %c0_i32_0 : i32, i32
  }
}

</mosaic_0001>

<bundles_post_ra>
// kernel: scene_graph_extractor.2
= control target key start
LH: loop header
LB: loop body
LE: loop exit
PB: predicated region body
PF: predicated region fallthrough
CT: control target
= control target key end

     0   :  { %vm651_vm1 = vcmask 516096   ;;  %vm582_vm3 = vcmask 1040384   ;;  %vm1410_vm7 = vmmov 1   ;;  %vm848_vm9 = vcmask 523264   ;;  %s2024_s1 = inlined_call_operand.vmem [shape: bf16[512,256], index: 1, kind: input, shape index: {}]   ;;  %s2025_s0 = inlined_call_operand.vmem [shape: f32[14,512], index: 0, kind: input, shape index: {}]   ;;  %s2026_s4 = inlined_call_operand.vmem [shape: bf16[256,64], index: 4, kind: input, shape index: {}]   ;;  %s2027_s2 = inlined_call_operand.vmem [shape: f32[1,256], index: 2, kind: input, shape index: {}]   ;;  %s2028_s3 = inlined_call_operand.vmem [shape: f32[1,256], index: 3, kind: input, shape index: {}]   ;;  %s2029_s8 = inlined_call_operand.vmem [shape: f32[1,8], index: 8, kind: input, shape index: {}]   ;;  %s2030_s7 = inlined_call_operand.vmem [shape: bf16[64,8], index: 7, kind: input, shape index: {}]   ;;  %s2031_s5 = inlined_call_operand.vmem [shape: f32[1,64], index: 5, kind: input, shape index: {}]   ;;  %s2032_s6 = inlined_call_operand.vmem [shape: f32[1,64], index: 6, kind: input, shape index: {}]   ;;  %s2033_s9 = inlined_call_operand.vmem [shape: f32[16,8], index: 9, kind: output, shape index: {}]  }
   0x1   :  { %v1033_v0 = vld [vmem:[%s2024_s1 + $0x70] sm:$0xf]  ;;  %v1333_v1 = vld [vmem:[%s2024_s1 + $0x74] sm:$0xf0]  ;;  %v1025_v11 = vld [vmem:[%s2024_s1 + $0x60] sm:$0xf] }
   0x2   :  { %v1097_v2 = vld [vmem:[%s2024_s1 + $0xf0] sm:$0xf]  ;;  %v1034_v3 = vor.u32 %v1333_v1, %v1033_v0  ;;  %v1349_v4 = vld [vmem:[%s2024_s1 + $0xf4] sm:$0xf0]  ;;  %v1331_v13 = vld [vmem:[%s2024_s1 + $0x64] sm:$0xf0] }
   0x3   :  { %v1161_v5 = vld [vmem:[%s2024_s1 + $0x170] sm:$0xf]  ;;  %v1365_v6 = vld [vmem:[%s2024_s1 + $0x174] sm:$0xf0]  ;;  %v1098_v7 = vor.u32 %v1349_v4, %v1097_v2  ;;  %v1089_v14 = vld [vmem:[%s2024_s1 + $0xe0] sm:$0xf]  ;;  %v1026_v16 = vor.u32 %v1331_v13, %v1025_v11 }
   0x4   :  { %v1162_v8 = vor.u32 %v1365_v6, %v1161_v5  ;;  %v1225_v9 = vld [vmem:[%s2024_s1 + $0x1f0] sm:$0xf]  ;;  %v1381_v10 = vld [vmem:[%s2024_s1 + $0x1f4] sm:$0xf0]  ;;  %429 = vmatpush.bf16.msra.mxu0 %v1034_v3  ;;  %v1347_v15 = vld [vmem:[%s2024_s1 + $0xe4] sm:$0xf0] }
   0x5   :  { %v1226_v12 = vor.u32 %v1381_v10, %v1225_v9  ;;  %443 = vmatpush.bf16.msra.mxu1 %v1098_v7  ;;  %v1090_v17 = vor.u32 %v1347_v15, %v1089_v14  ;;  %v1153_v18 = vld [vmem:[%s2024_s1 + $0x160] sm:$0xf]  ;;  %v1363_v19 = vld [vmem:[%s2024_s1 + $0x164] sm:$0xf0]  ;;  %v1017_v23 = vld [vmem:[%s2024_s1 + $0x50] sm:$0xf] }
   0x6   :  { %457 = vmatpush.bf16.msra.mxu2 %v1162_v8  ;;  %v1217_v20 = vld [vmem:[%s2024_s1 + $0x1e0] sm:$0xf]  ;;  %v1154_v21 = vor.u32 %v1363_v19, %v1153_v18  ;;  %v1379_v22 = vld [vmem:[%s2024_s1 + $0x1e4] sm:$0xf0]  ;;  %v1329_v24 = vld [vmem:[%s2024_s1 + $0x54] sm:$0xf0] }
   0x7   :  { %471 = vmatpush.bf16.msra.mxu3 %v1226_v12  ;;  %v1218_v25 = vor.u32 %v1379_v22, %v1217_v20  ;;  %v1081_v26 = vld [vmem:[%s2024_s1 + $0xd0] sm:$0xf]  ;;  %v1345_v27 = vld [vmem:[%s2024_s1 + $0xd4] sm:$0xf0]  ;;  %v1018_v29 = vor.u32 %v1329_v24, %v1017_v23  ;;  %v1009_v35 = vld [vmem:[%s2024_s1 + $0x40] sm:$0xf] }
   0x8   :  { %v1145_v28 = vld [vmem:[%s2024_s1 + $0x150] sm:$0xf]  ;;  %430 = vmatpush.bf16.msra.mxu0 %v1026_v16  ;;  %v1361_v30 = vld [vmem:[%s2024_s1 + $0x154] sm:$0xf0]  ;;  %v1082_v33 = vor.u32 %v1345_v27, %v1081_v26  ;;  %v1327_v36 = vld [vmem:[%s2024_s1 + $0x44] sm:$0xf0] }
   0x9   :  { %v1209_v31 = vld [vmem:[%s2024_s1 + $0x1d0] sm:$0xf]  ;;  %v1377_v32 = vld [vmem:[%s2024_s1 + $0x1d4] sm:$0xf0]  ;;  %444 = vmatpush.bf16.msra.mxu1 %v1090_v17  ;;  %v1146_v34 = vor.u32 %v1361_v30, %v1145_v28  ;;  %v1073_v37 = vld [vmem:[%s2024_s1 + $0xc0] sm:$0xf]  ;;  %v1010_v44 = vor.u32 %v1327_v36, %v1009_v35 }
   0xa   :  { %458 = vmatpush.bf16.msra.mxu2 %v1154_v21  ;;  %v1210_v38 = vor.u32 %v1377_v32, %v1209_v31  ;;  %v1343_v39 = vld [vmem:[%s2024_s1 + $0xc4] sm:$0xf0]  ;;  %v1137_v40 = vld [vmem:[%s2024_s1 + $0x140] sm:$0xf]  ;;  %v1001_v47 = vld [vmem:[%s2024_s1 + $0x30] sm:$0xf] }
   0xb   :  { %472 = vmatpush.bf16.msra.mxu3 %v1218_v25  ;;  %v1359_v41 = vld [vmem:[%s2024_s1 + $0x144] sm:$0xf0]  ;;  %v1201_v42 = vld [vmem:[%s2024_s1 + $0x1c0] sm:$0xf]  ;;  %v1074_v45 = vor.u32 %v1343_v39, %v1073_v37  ;;  %v1325_v48 = vld [vmem:[%s2024_s1 + $0x34] sm:$0xf0] }
   0xc   :  { %v1375_v43 = vld [vmem:[%s2024_s1 + $0x1c4] sm:$0xf0]  ;;  %431 = vmatpush.bf16.msra.mxu0 %v1018_v29  ;;  %v1138_v46 = vor.u32 %v1359_v41, %v1137_v40  ;;  %v1065_v49 = vld [vmem:[%s2024_s1 + $0xb0] sm:$0xf]  ;;  %v1341_v51 = vld [vmem:[%s2024_s1 + $0xb4] sm:$0xf0]  ;;  %v1002_v56 = vor.u32 %v1325_v48, %v1001_v47 }
   0xd   :  { %445 = vmatpush.bf16.msra.mxu1 %v1082_v33  ;;  %v1202_v50 = vor.u32 %v1375_v43, %v1201_v42  ;;  %v1129_v52 = vld [vmem:[%s2024_s1 + $0x130] sm:$0xf]  ;;  %v1357_v53 = vld [vmem:[%s2024_s1 + $0x134] sm:$0xf0]  ;;  %v1066_v57 = vor.u32 %v1341_v51, %v1065_v49  ;;  %v993_v59 = vld [vmem:[%s2024_s1 + $0x20] sm:$0xf] }
   0xe   :  { %459 = vmatpush.bf16.msra.mxu2 %v1146_v34  ;;  %v1193_v54 = vld [vmem:[%s2024_s1 + $0x1b0] sm:$0xf]  ;;  %v1373_v55 = vld [vmem:[%s2024_s1 + $0x1b4] sm:$0xf0]  ;;  %v1130_v58 = vor.u32 %v1357_v53, %v1129_v52  ;;  %v1323_v60 = vld [vmem:[%s2024_s1 + $0x24] sm:$0xf0] }
   0xf   :  { %473 = vmatpush.bf16.msra.mxu3 %v1210_v38  ;;  %v1057_v61 = vld [vmem:[%s2024_s1 + $0xa0] sm:$0xf]  ;;  %v1194_v62 = vor.u32 %v1373_v55, %v1193_v54  ;;  %v1339_v63 = vld [vmem:[%s2024_s1 + $0xa4] sm:$0xf0]  ;;  %v994_v4 = vor.u32 %v1323_v60, %v993_v59  ;;  %v985_v5 = vld [vmem:[%s2024_s1 + $0x10] sm:$0xf] }
  0x10   :  { %432 = vmatpush.bf16.msra.mxu0 %v1010_v44  ;;  %v1121_v0 = vld [vmem:[%s2024_s1 + $0x120] sm:$0xf]  ;;  %v1355_v1 = vld [vmem:[%s2024_s1 + $0x124] sm:$0xf0]  ;;  %v1058_v6 = vor.u32 %v1339_v63, %v1057_v61  ;;  %v1321_v8 = vld [vmem:[%s2024_s1 + $0x14] sm:$0xf0] }
  0x11   :  { %446 = vmatpush.bf16.msra.mxu1 %v1074_v45  ;;  %v1185_v2 = vld [vmem:[%s2024_s1 + $0x1a0] sm:$0xf]  ;;  %v1371_v3 = vld [vmem:[%s2024_s1 + $0x1a4] sm:$0xf0]  ;;  %v1122_v7 = vor.u32 %v1355_v1, %v1121_v0  ;;  %v1049_v9 = vld [vmem:[%s2024_s1 + $0x90] sm:$0xf]  ;;  %v986_v18 = vor.u32 %v1321_v8, %v985_v5 }
  0x12   :  { %460 = vmatpush.bf16.msra.mxu2 %v1138_v46  ;;  %v1337_v10 = vld [vmem:[%s2024_s1 + $0x94] sm:$0xf0]  ;;  %v1186_v11 = vor.u32 %v1371_v3, %v1185_v2  ;;  %v1113_v12 = vld [vmem:[%s2024_s1 + $0x110] sm:$0xf]  ;;  %v977_v16 = vld [vmem:[%s2024_s1] sm:$0xf] }
  0x13   :  { %474 = vmatpush.bf16.msra.mxu3 %v1202_v50  ;;  %v1353_v13 = vld [vmem:[%s2024_s1 + $0x114] sm:$0xf0]  ;;  %v1177_v14 = vld [vmem:[%s2024_s1 + $0x190] sm:$0xf]  ;;  %v1319_v17 = vld [vmem:[%s2024_s1 + $0x4] sm:$0xf0]  ;;  %v1050_v23 = vor.u32 %v1337_v10, %v1049_v9 }
  0x14   :  { %433 = vmatpush.bf16.msra.mxu0 %v1002_v56  ;;  %v1369_v15 = vld [vmem:[%s2024_s1 + $0x194] sm:$0xf0]  ;;  %v1041_v19 = vld [vmem:[%s2024_s1 + $0x80] sm:$0xf]  ;;  %v1335_v20 = vld [vmem:[%s2024_s1 + $0x84] sm:$0xf0]  ;;  %v1114_v24 = vor.u32 %v1353_v13, %v1113_v12  ;;  %v978_v35 = vor.u32 %v1319_v17, %v977_v16 }
  0x15   :  { %447 = vmatpush.bf16.msra.mxu1 %v1066_v57  ;;  %v1105_v21 = vld [vmem:[%s2024_s1 + $0x100] sm:$0xf]  ;;  %v1351_v22 = vld [vmem:[%s2024_s1 + $0x104] sm:$0xf0]  ;;  %v1332_v27 = vld [vmem:[%s2024_s1 + $0x74] sm:$0xf]  ;;  %v1178_v28 = vor.u32 %v1369_v15, %v1177_v14  ;;  %v1042_v39 = vor.u32 %v1335_v20, %v1041_v19 }
  0x16   :  { %461 = vmatpush.bf16.msra.mxu2 %v1130_v58  ;;  %v1169_v25 = vld [vmem:[%s2024_s1 + $0x180] sm:$0xf]  ;;  %v1367_v26 = vld [vmem:[%s2024_s1 + $0x184] sm:$0xf0]  ;;  %v1035_v29 = vld [vmem:[%s2024_s1 + $0x78] sm:$0xf0]  ;;  %v1106_v40 = vor.u32 %v1351_v22, %v1105_v21 }
  0x17   :  { %475 = vmatpush.bf16.msra.mxu3 %v1194_v62  ;;  %v1348_v30 = vld [vmem:[%s2024_s1 + $0xf4] sm:$0xf]  ;;  %v1099_v31 = vld [vmem:[%s2024_s1 + $0xf8] sm:$0xf0]  ;;  %v1330_v43 = vld [vmem:[%s2024_s1 + $0x64] sm:$0xf]  ;;  %v1170_v44 = vor.u32 %v1367_v26, %v1169_v25  ;;  %v1038_v45 = vor.u32 %v1332_v27, %v1035_v29 }
  0x18   :  { %434 = vmatpush.bf16.msra.mxu0 %v994_v4  ;;  %v1364_v32 = vld [vmem:[%s2024_s1 + $0x174] sm:$0xf]  ;;  %v1163_v33 = vld [vmem:[%s2024_s1 + $0x178] sm:$0xf0]  ;;  %v1027_v46 = vld [vmem:[%s2024_s1 + $0x68] sm:$0xf0]  ;;  %v1102_v49 = vor.u32 %v1348_v30, %v1099_v31 }
  0x19   :  { %448 = vmatpush.bf16.msra.mxu1 %v1058_v6  ;;  %v1380_v34 = vld [vmem:[%s2024_s1 + $0x1f4] sm:$0xf]  ;;  %v1227_v36 = vld [vmem:[%s2024_s1 + $0x1f8] sm:$0xf0]  ;;  %v33_v47 = vld [vmem:[%s2025_s0] sm:$0xff]  ;;  %v1166_v50 = vor.u32 %v1364_v32, %v1163_v33  ;;  %v1030_v63 = vor.u32 %v1330_v43, %v1027_v46  ;;  %vm966_vm13 = vcmask 64512  }
  0x1a   :  { %462 = vmatpush.bf16.msra.mxu2 %v1122_v7  ;;  %v35_v37 = vld [vmem:[%s2025_s0 + $0x10] sm:$0xff]  ;;  %v36_v41 = vld [vmem:[%s2025_s0 + $0x18] sm:$0xff]  ;;  %v37_v48 = vld [vmem:[%s2025_s0 + $0x20] sm:$0xff]  ;;  %v1230_v54 = vor.u32 %v1380_v34, %v1227_v36 }
  0x1b   :  { %476 = vmatpush.bf16.msra.mxu3 %v1186_v11  ;;  %v39_v38 = vld [vmem:[%s2025_s0 + $0x30] sm:$0xff]  ;;  %v40_v42 = vld [vmem:[%s2025_s0 + $0x38] sm:$0xff]  ;;  %v1346_v51 = vld [vmem:[%s2024_s1 + $0xe4] sm:$0xf]  ;;  %v1729_v62 = vpack.c.bf16 %v37_v48, %v33_v47 }
  0x1c   :  { %435 = vmatpush.bf16.msra.mxu0 %v986_v18  ;;  %v34_v52 = vld [vmem:[%s2025_s0 + $0x8] sm:$0xff]  ;;  %v1710_v55 = vpack.c.bf16 %v39_v38, %v35_v37  ;;  %v1362_v57 = vld [vmem:[%s2024_s1 + $0x164] sm:$0xf]  ;;  %v1721_v59 = vpack.c.bf16 %v40_v42, %v36_v41  ;;  %v1328_v3 = vld [vmem:[%s2024_s1 + $0x54] sm:$0xf] }
  0x1d   :  { %449 = vmatpush.bf16.msra.mxu1 %v1050_v23  ;;  %v38_v53 = vld [vmem:[%s2025_s0 + $0x28] sm:$0xff]  ;;  %v1378_v60 = vld [vmem:[%s2024_s1 + $0x1e4] sm:$0xf]  ;;  %v1019_v4 = vld [vmem:[%s2024_s1 + $0x58] sm:$0xf0] }
  0x1e   :  { %463 = vmatpush.bf16.msra.mxu2 %v1114_v24  ;;  %v1091_v56 = vld [vmem:[%s2024_s1 + $0xe8] sm:$0xf0]  ;;  %v1731_v0 = vpack.c.bf16 %v38_v53, %v34_v52  ;;  %v1344_v5 = vld [vmem:[%s2024_s1 + $0xd4] sm:$0xf]  ;;  %v1083_v7 = vld [vmem:[%s2024_s1 + $0xd8] sm:$0xf0]  ;;  %v1022_v12 = vor.u32 %v1328_v3, %v1019_v4 }
  0x1f   :  { %477 = vmatpush.bf16.msra.mxu3 %v1178_v28  ;;  %v1155_v58 = vld [vmem:[%s2024_s1 + $0x168] sm:$0xf0]  ;;  %v1094_v1 = vor.u32 %v1346_v51, %v1091_v56  ;;  %v1360_v8 = vld [vmem:[%s2024_s1 + $0x154] sm:$0xf]  ;;  %v1147_v9 = vld [vmem:[%s2024_s1 + $0x158] sm:$0xf0]  ;;  %v1086_v13 = vor.u32 %v1344_v5, %v1083_v7 }
  0x20   :  { %436 = vmatpush.bf16.msra.mxu0 %v978_v35  ;;  %v1219_v61 = vld [vmem:[%s2024_s1 + $0x1e8] sm:$0xf0]  ;;  %v1158_v2 = vor.u32 %v1362_v57, %v1155_v58  ;;  %v1376_v10 = vld [vmem:[%s2024_s1 + $0x1d4] sm:$0xf]  ;;  %v1211_v11 = vld [vmem:[%s2024_s1 + $0x1d8] sm:$0xf0]  ;;  %v1150_v14 = vor.u32 %v1360_v8, %v1147_v9 }
  0x21   :  { %450 = vmatpush.bf16.msra.mxu1 %v1042_v39  ;;  %v1222_v6 = vor.u32 %v1378_v60, %v1219_v61  ;;  %v1326_v15 = vld [vmem:[%s2024_s1 + $0x44] sm:$0xf]  ;;  %v1011_v16 = vld [vmem:[%s2024_s1 + $0x48] sm:$0xf0]  ;;  %v1214_v18 = vor.u32 %v1376_v10, %v1211_v11  ;;  %v1324_v27 = vld [vmem:[%s2024_s1 + $0x34] sm:$0xf] }
  0x22   :  { %464 = vmatpush.bf16.msra.mxu2 %v1106_v40  ;;  %v1342_v17 = vld [vmem:[%s2024_s1 + $0xc4] sm:$0xf]  ;;  %v1075_v19 = vld [vmem:[%s2024_s1 + $0xc8] sm:$0xf0]  ;;  %v1014_v24 = vor.u32 %v1326_v15, %v1011_v16  ;;  %v1003_v28 = vld [vmem:[%s2024_s1 + $0x38] sm:$0xf0]  ;;  %v542_v16 = vlaneseq }
  0x23   :  { %478 = vmatpush.bf16.msra.mxu3 %v1170_v44  ;;  %437 = vmatmul.bf16.vlgmr.msra.gmra.mxu0 %v1729_v62  ;;  %v1358_v20 = vld [vmem:[%s2024_s1 + $0x144] sm:$0xf]  ;;  %v1139_v21 = vld [vmem:[%s2024_s1 + $0x148] sm:$0xf0]  ;;  %v1078_v25 = vor.u32 %v1342_v17, %v1075_v19  ;;  %v1340_v29 = vld [vmem:[%s2024_s1 + $0xb4] sm:$0xf]  ;;  %v1006_v36 = vor.u32 %v1324_v27, %v1003_v28 }
  0x24   :  { %485 = vmatpush.bf16.msrb.mxu0 %v1038_v45  ;;  %451 = vmatmul.bf16.vlgmr.msra.gmra.mxu1 %v1731_v0  ;;  %v1374_v22 = vld [vmem:[%s2024_s1 + $0x1c4] sm:$0xf]  ;;  %v1203_v23 = vld [vmem:[%s2024_s1 + $0x1c8] sm:$0xf0]  ;;  %v1142_v26 = vor.u32 %v1358_v20, %v1139_v21  ;;  %v1067_v31 = vld [vmem:[%s2024_s1 + $0xb8] sm:$0xf0] }
  0x25   :  { %499 = vmatpush.bf16.msrb.mxu1 %v1102_v49  ;;  %465 = vmatmul.bf16.vlgmr.msra.gmra.mxu2 %v1710_v55  ;;  %v1206_v30 = vor.u32 %v1374_v22, %v1203_v23  ;;  %v1356_v32 = vld [vmem:[%s2024_s1 + $0x134] sm:$0xf]  ;;  %v1131_v33 = vld [vmem:[%s2024_s1 + $0x138] sm:$0xf0]  ;;  %v1070_v37 = vor.u32 %v1340_v29, %v1067_v31  ;;  %v1322_v39 = vld [vmem:[%s2024_s1 + $0x24] sm:$0xf] }
  0x26   :  { %513 = vmatpush.bf16.msrb.mxu2 %v1166_v50  ;;  %479 = vmatmul.bf16.vlgmr.msra.gmra.mxu3 %v1721_v59  ;;  %v1372_v34 = vld [vmem:[%s2024_s1 + $0x1b4] sm:$0xf]  ;;  %v1195_v35 = vld [vmem:[%s2024_s1 + $0x1b8] sm:$0xf0]  ;;  %v1134_v38 = vor.u32 %v1356_v32, %v1131_v33  ;;  %v995_v40 = vld [vmem:[%s2024_s1 + $0x28] sm:$0xf0] }
  0x27   :  { %527 = vmatpush.bf16.msrb.mxu3 %v1230_v54  ;;  %v1338_v41 = vld [vmem:[%s2024_s1 + $0xa4] sm:$0xf]  ;;  %v1198_v42 = vor.u32 %v1372_v34, %v1195_v35  ;;  %v1059_v43 = vld [vmem:[%s2024_s1 + $0xa8] sm:$0xf0]  ;;  %v998_v48 = vor.u32 %v1322_v39, %v995_v40  ;;  %v1320_v51 = vld [vmem:[%s2024_s1 + $0x14] sm:$0xf] }
  0x28   :  { %486 = vmatpush.bf16.msrb.mxu0 %v1030_v63  ;;  %v1354_v44 = vld [vmem:[%s2024_s1 + $0x124] sm:$0xf]  ;;  %v1123_v45 = vld [vmem:[%s2024_s1 + $0x128] sm:$0xf0]  ;;  %v1062_v49 = vor.u32 %v1338_v41, %v1059_v43  ;;  %v987_v52 = vld [vmem:[%s2024_s1 + $0x18] sm:$0xf0] }
  0x29   :  { %500 = vmatpush.bf16.msrb.mxu1 %v1094_v1  ;;  %v1370_v46 = vld [vmem:[%s2024_s1 + $0x1a4] sm:$0xf]  ;;  %v1187_v47 = vld [vmem:[%s2024_s1 + $0x1a8] sm:$0xf0]  ;;  %v1126_v50 = vor.u32 %v1354_v44, %v1123_v45  ;;  %v1336_v53 = vld [vmem:[%s2024_s1 + $0x94] sm:$0xf]  ;;  %v990_v63 = vor.u32 %v1320_v51, %v987_v52 }
  0x2a   :  { %514 = vmatpush.bf16.msrb.mxu2 %v1158_v2  ;;  %v1190_v54 = vor.u32 %v1370_v46, %v1187_v47  ;;  %v1051_v56 = vld [vmem:[%s2024_s1 + $0x98] sm:$0xf0]  ;;  %v1352_v57 = vld [vmem:[%s2024_s1 + $0x114] sm:$0xf]  ;;  %v1318_v3 = vld [vmem:[%s2024_s1 + $0x4] sm:$0xf] }
  0x2b   :  { %528 = vmatpush.bf16.msrb.mxu3 %v1222_v6  ;;  %v1115_v58 = vld [vmem:[%s2024_s1 + $0x118] sm:$0xf0]  ;;  %v1368_v60 = vld [vmem:[%s2024_s1 + $0x194] sm:$0xf]  ;;  %v1054_v1 = vor.u32 %v1336_v53, %v1051_v56  ;;  %v979_v4 = vld [vmem:[%s2024_s1 + $0x8] sm:$0xf0] }
  0x2c   :  { %487 = vmatpush.bf16.msrb.mxu0 %v1022_v12  ;;  %v1179_v61 = vld [vmem:[%s2024_s1 + $0x198] sm:$0xf0]  ;;  %v1118_v2 = vor.u32 %v1352_v57, %v1115_v58  ;;  %v1334_v5 = vld [vmem:[%s2024_s1 + $0x84] sm:$0xf]  ;;  %v1043_v7 = vld [vmem:[%s2024_s1 + $0x88] sm:$0xf0]  ;;  %v982_v12 = vor.u32 %v1318_v3, %v979_v4 }
  0x2d   :  { %501 = vmatpush.bf16.msrb.mxu1 %v1086_v13  ;;  %v1182_v6 = vor.u32 %v1368_v60, %v1179_v61  ;;  %v1350_v8 = vld [vmem:[%s2024_s1 + $0x104] sm:$0xf]  ;;  %v1107_v9 = vld [vmem:[%s2024_s1 + $0x108] sm:$0xf0]  ;;  %v1046_v13 = vor.u32 %v1334_v5, %v1043_v7  ;;  %vm1885_vm0 = vcmp.lt.s32.totalorder %v542_v16, 256  ;;  %v543_v23 = vshrl.u32 %v542_v16, 7 }
  0x2e   :  { %515 = vmatpush.bf16.msrb.mxu2 %v1150_v14  ;;  %v1366_v10 = vld [vmem:[%s2024_s1 + $0x184] sm:$0xf]  ;;  %v1171_v11 = vld [vmem:[%s2024_s1 + $0x188] sm:$0xf0]  ;;  %v1110_v14 = vor.u32 %v1350_v8, %v1107_v9  ;;  %v1388_v9 = vld [vmem:[%s2026_s4 + $0x30] sm:$0xff] }
  0x2f   :  { %529 = vmatpush.bf16.msrb.mxu3 %v1214_v18  ;;  %v1174_v15 = vor.u32 %v1366_v10, %v1171_v11  ;;  %v1409_v18 = vmov 0.0   ;;  %v1895_v27 = vadd.s32 8, %v543_v23  ;;  %v1396_v10 = vld [vmem:[%s2026_s4 + $0x70] sm:$0xff]  ;;  %v1386_v23 = vld [vmem:[%s2026_s4 + $0x20] sm:$0xff]  ;;  %v1391_v17 = vld [vmem:[%s2026_s4 + $0x48] sm:$0xff] }
  0x30   :  { %488 = vmatpush.bf16.msrb.mxu0 %v1014_v24  ;;  %562 = vst.msk [vmem:[#allocation4] sm:$0x3] %vm1885_vm0, %v1409_v18 }
  0x31   :  { %502 = vmatpush.bf16.msrb.mxu1 %v1078_v25  ;;  %563 = vst.msk [vmem:[#allocation5] sm:$0x3] %vm1885_vm0, %v1409_v18  ;;  %vm549_vm2 = vcmp.lt.s32.totalorder %v1895_v27, 14  ;;  %v1399_v27 = vld [vmem:[%s2030_s7 + $0x8] sm:$0xff] }
  0x32   :  { %516 = vmatpush.bf16.msrb.mxu2 %v1142_v26  ;;  %652 = vst.msk [vmem:[#allocation6] sm:$0x1] %vm651_vm1, %v1409_v18  ;;  %vm1295_vm8 = vmpackc.low %vm549_vm2, %vm1410_vm7 }
  0x33   :  { %530 = vmatpush.bf16.msrb.mxu3 %v1206_v30  ;;  %653 = vst.msk [vmem:[#allocation7] sm:$0x1] %vm651_vm1, %v1409_v18  ;;  %v1387_v18 = vld [vmem:[%s2026_s4 + $0x28] sm:$0xff] }
  0x34   :  { %489 = vmatpush.bf16.msrb.mxu0 %v1006_v36 }
  0x35   :  { %503 = vmatpush.bf16.msrb.mxu1 %v1070_v37 }
  0x36   :  { %517 = vmatpush.bf16.msrb.mxu2 %v1134_v38 }
  0x37   :  { %531 = vmatpush.bf16.msrb.mxu3 %v1198_v42 }
  0x38   :  { %490 = vmatpush.bf16.msrb.mxu0 %v998_v48 }
  0x39   :  { %504 = vmatpush.bf16.msrb.mxu1 %v1062_v49 }
  0x3a   :  { %518 = vmatpush.bf16.msrb.mxu2 %v1126_v50 }
  0x3b   :  { %532 = vmatpush.bf16.msrb.mxu3 %v1190_v54 }
  0x3c   :  { %491 = vmatpush.bf16.msrb.mxu0 %v990_v63 }
  0x3d   :  { %505 = vmatpush.bf16.msrb.mxu1 %v1054_v1  ;;  %v1389_v1 = vld [vmem:[%s2026_s4 + $0x38] sm:$0xff] }
  0x3e   :  { %519 = vmatpush.bf16.msrb.mxu2 %v1118_v2  ;;  %v1397_v2 = vld [vmem:[%s2026_s4 + $0x78] sm:$0xff] }
  0x3f   :  { %533 = vmatpush.bf16.msrb.mxu3 %v1182_v6 }
  0x40   :  { %492 = vmatpush.bf16.msrb.mxu0 %v982_v12 }
  0x41   :  { %506 = vmatpush.bf16.msrb.mxu1 %v1046_v13 }
  0x42   :  { %520 = vmatpush.bf16.msrb.mxu2 %v1110_v14 }
  0x43   :  { %534 = vmatpush.bf16.msrb.mxu3 %v1174_v15  ;;  %493 = vmatmul.bf16.vlgmr.msrb.gmra.mxu0 %v1729_v62 }
  0x44   :  { %507 = vmatmul.bf16.vlgmr.msrb.gmra.mxu1 %v1731_v0  ;;  %819 = vmatpush.bf16.msra.mxu0 %v1389_v1 }
  0x45   :  { %521 = vmatmul.bf16.vlgmr.msrb.gmra.mxu2 %v1710_v55  ;;  %833 = vmatpush.bf16.msra.mxu1 %v1397_v2 }
  0x46   :  { %535 = vmatmul.bf16.vlgmr.msrb.gmra.mxu3 %v1721_v59 }
  0x48   :  { %820 = vmatpush.bf16.msra.mxu0 %v1388_v9 }
  0x49   :  { %834 = vmatpush.bf16.msra.mxu1 %v1396_v10 }
  0x4c   :  { %821 = vmatpush.bf16.msra.mxu0 %v1387_v18 }
  0x50   :  { %822 = vmatpush.bf16.msra.mxu0 %v1386_v23 }
  0xa0   :  { %v438_v55 = vpop.f32.mrf.mxu0 }
  0xa1   :  { %v452_v62 = vpop.f32.mrf.mxu1 }
  0xa2   :  { %v453_v24 = vadd.f32 %v452_v62, %v438_v55  ;;  %v1395_v55 = vld [vmem:[%s2026_s4 + $0x68] sm:$0xff] }
  0xa3   :  { %835 = vmatpush.bf16.msra.mxu1 %v1395_v55 }
  0xa8   :  { %v466_v59 = vpop.f32.mrf.mxu2  ;;  %v440_v19 = vpop.f32.mrf.mxu0 }
  0xa9   :  { %v480_v0 = vpop.f32.mrf.mxu3  ;;  %v454_v20 = vpop.f32.mrf.mxu1  ;;  %v467_v28 = vadd.f32 %v466_v59, %v453_v24  ;;  %v1394_v24 = vld [vmem:[%s2026_s4 + $0x60] sm:$0xff] }
  0xaa   :  { %v455_v21 = vadd.f32 %v454_v20, %v440_v19  ;;  %v564_v20 = vld [vmem:[#allocation4] sm:$0x3]  ;;  %836 = vmatpush.bf16.msra.mxu1 %v1394_v24 }
  0xab   :  { %v1898_v32 = vadd.f32 %v480_v0, %v467_v28  ;;  %v591_v28 = vld [vmem:[#allocation5] sm:$0x3] }
  0xad   :  { %v592_v36 = vmul.f32 %v1898_v32, %v1898_v32 }
  0xb0   :  { %v468_v22 = vpop.f32.mrf.mxu2 }
  0xb1   :  { %v469_v25 = vadd.f32 %v468_v22, %v455_v21  ;;  %v482_v26 = vpop.f32.mrf.mxu3 }
  0xb3   :  { %v483_v31 = vadd.f32 %v482_v26, %v469_v25 }
  0xb5   :  { %v1902_v33 = vsel %vm549_vm2, %v483_v31, 0.0 }
  0xb6   :  { %v594_v37 = vmul.f32 %v1902_v33, %v1902_v33  ;;  %v565_v39 = vadd.f32 %v1902_v33, %v1898_v32 }
  0xb8   :  { %v596_v42 = vadd.f32 %v594_v37, %v592_v36  ;;  %v566_v45 = vrot.slane %v565_v39, 4  ;;  %v1393_v36 = vld [vmem:[%s2026_s4 + $0x58] sm:$0xff]  ;;  %v1384_v37 = vld [vmem:[%s2026_s4 + $0x10] sm:$0xff] }
  0xb9   :  { %837 = vmatpush.bf16.msra.mxu1 %v1393_v36 }
  0xba   :  { %v597_v48 = vrot.slane %v596_v42, 4  ;;  %v567_v52 = vadd.f32 %v566_v45, %v565_v39 }
  0xbc   :  { %v598_v54 = vadd.f32 %v597_v48, %v596_v42  ;;  %v568_v60 = vrot.slane %v567_v52, 2 }
  0xbe   :  { %v599_v3 = vrot.slane %v598_v54, 2  ;;  %v569_v6 = vadd.f32 %v568_v60, %v567_v52 }
  0xc0   :  { %v494_v29 = vpop.f32.mrf.mxu0  ;;  %v600_v11 = vadd.f32 %v599_v3, %v598_v54  ;;  %v570_v14 = vrot.slane %v569_v6, 1 }
  0xc1   :  { %v508_v30 = vpop.f32.mrf.mxu1 }
  0xc2   :  { %v509_v38 = vadd.f32 %v508_v30, %v494_v29  ;;  %v601_v62 = vrot.slane %v600_v11, 1  ;;  %v571_v19 = vadd.f32 %v570_v14, %v569_v6 }
  0xc4   :  { %v602_v25 = vadd.f32 %v601_v62, %v600_v11 }
  0xc8   :  { %v522_v34 = vpop.f32.mrf.mxu2  ;;  %v496_v40 = vpop.f32.mrf.mxu0 }
  0xc9   :  { %v536_v35 = vpop.f32.mrf.mxu3  ;;  %v510_v41 = vpop.f32.mrf.mxu1  ;;  %v523_v43 = vadd.f32 %v522_v34, %v509_v38  ;;  %v1392_v38 = vld [vmem:[%s2026_s4 + $0x50] sm:$0xff] }
  0xca   :  { %v511_v44 = vadd.f32 %v510_v41, %v496_v40  ;;  %838 = vmatpush.bf16.msra.mxu1 %v1392_v38  ;;  %v1383_v41 = vld [vmem:[%s2026_s4 + $0x8] sm:$0xff] }
  0xcb   :  { %v1910_v49 = vadd.f32 %v536_v35, %v523_v43  ;;  %v1385_v35 = vld [vmem:[%s2026_s4 + $0x18] sm:$0xff] }
  0xcc   :  { %823 = vmatpush.bf16.msra.mxu0 %v1385_v35 }
  0xcd   :  { %v593_v56 = vmul.f32 %v1910_v49, %v1910_v49 }
  0xce   :  { %839 = vmatpush.bf16.msra.mxu1 %v1391_v17 }
  0xd0   :  { %v524_v46 = vpop.f32.mrf.mxu2  ;;  %824 = vmatpush.bf16.msra.mxu0 %v1384_v37 }
  0xd1   :  { %v525_v47 = vadd.f32 %v524_v46, %v511_v44  ;;  %v538_v50 = vpop.f32.mrf.mxu3  ;;  %v1382_v46 = vld [vmem:[%s2026_s4] sm:$0xff] }
  0xd3   :  { %v539_v51 = vadd.f32 %v538_v50, %v525_v47  ;;  %v1390_v47 = vld [vmem:[%s2026_s4 + $0x40] sm:$0xff] }
  0xd4   :  { %825 = vmatpush.bf16.msra.mxu0 %v1383_v41  ;;  %840 = vmatpush.bf16.msra.mxu1 %v1390_v47 }
  0xd5   :  { %v1914_v53 = vsel %vm549_vm2, %v539_v51, 0.0 }
  0xd6   :  { %v572_v57 = vadd.f32 %v1914_v53, %v1910_v49  ;;  %v595_v58 = vmul.f32 %v1914_v53, %v1914_v53 }
  0xd8   :  { %v573_v61 = vrot.slane %v572_v57, 4  ;;  %v603_v63 = vadd.f32 %v595_v58, %v593_v56  ;;  %826 = vmatpush.bf16.msra.mxu0 %v1382_v46 }
  0xda   :  { %v574_v4 = vadd.f32 %v573_v61, %v572_v57  ;;  %v604_v5 = vrot.slane %v603_v63, 4  ;;  %v635_v57 = vld [vmem:[%s2027_s2] sm:$0x3] }
  0xdc   :  { %v575_v7 = vrot.slane %v574_v4, 2  ;;  %v605_v8 = vadd.f32 %v604_v5, %v603_v63  ;;  %v648_v63 = vld [vmem:[%s2028_s3] sm:$0x3] }
  0xde   :  { %v576_v12 = vadd.f32 %v575_v7, %v574_v4  ;;  %v606_v13 = vrot.slane %v605_v8, 2 }
  0xe0   :  { %v577_v15 = vrot.slane %v576_v12, 1  ;;  %v607_v16 = vadd.f32 %v606_v13, %v605_v8 }
  0xe2   :  { %v578_v59 = vadd.f32 %v577_v15, %v576_v12  ;;  %v608_v0 = vrot.slane %v607_v16, 1 }
  0xe4   :  { %v581_v21 = vrot.slane %v578_v59, 7  ;;  %v609_v22 = vadd.f32 %v608_v0, %v607_v16  ;;  %v1400_v59 = vld [vmem:[%s2030_s7 + $0x10] sm:$0xff] }
  0xe6   :  { %v583_v26 = vsel %vm582_vm3, %v571_v19, %v581_v21  ;;  %v612_v29 = vrot.slane %v609_v22, 7  ;;  %v1398_v21 = vld [vmem:[%s2030_s7] sm:$0xff] }
  0xe7   :  { %v585_v30 = vadd.f32 %v583_v26, %v564_v20 }
  0xe8   :  { %v613_v31 = vsel %vm582_vm3, %v602_v25, %v612_v29 }
  0xe9   :  { %590 = vst.msk [vmem:[#allocation4] sm:$0x3] %vm1885_vm0, %v585_v30  ;;  %v615_v34 = vadd.f32 %v613_v31, %v591_v28 }
  0xeb   :  { %616 = vst.msk [vmem:[#allocation5] sm:$0x3] %vm1885_vm0, %v615_v34 }
  0xf0   :  { %v629_v39 = vld [vmem:[#allocation4] sm:$0x3] }
  0xf1   :  { %v630_v40 = vmul.f32 0.071428575, %v629_v39 }
  0xf2   :  { %v631_v42 = vld [vmem:[#allocation5] sm:$0x3] }
  0xf3   :  { %v632_v43 = vmul.f32 0.071428575, %v631_v42  ;;  %v633_v44 = vmul.f32 %v630_v40, %v630_v40  ;;  %v847_v42 = vld [vmem:[#allocation6] sm:$0x1] }
  0xf5   :  { %v634_v45 = vsub.f32 %v632_v43, %v633_v44 }
  0xf7   :  { %v636_v48 = vadd.f32 1e-05, %v634_v45  ;;  %v860_v45 = vld [vmem:[#allocation7] sm:$0x1] }
  0xf9   :  { %1405 = vrsqrt.f32 %v636_v48  ;;  %vm643_vm5 = vweird.f32 %v636_v48 }
  0xff   :  { %v1406_v50 = vpop.eup %1405 }
 0x100   :  { %v638_v51 = vmul.f32 %v1406_v50, %v636_v48  ;;  %vm644_vm4 = vweird.f32 %v1406_v50 }
 0x101   :  { %vm645_vm6 = vmor %vm643_vm5, %vm644_vm4 }
 0x102   :  { %v639_v52 = vmul.f32 %v1406_v50, %v638_v51 }
 0x104   :  { %v640_v54 = vmul.f32 0.5, %v639_v52 }
 0x106   :  { %v641_v56 = vsub.f32 1.5, %v640_v54 }
 0x108   :  { %v642_v58 = vmul.f32 %v1406_v50, %v641_v56 }
 0x10a   :  { %v646_v60 = vsel %vm645_vm6, %v1406_v50, %v642_v58 }
 0x10b   :  { %v647_v61 = vmul.f32 %v646_v60, %v635_v57 }
 0x10d   :  { %v649_v1 = vmul.f32 %v647_v61, %v630_v40  ;;  %v662_v2 = vperm.slane %v647_v61, 0  ;;  %v663_v3 = vperm.slane %v647_v61, 1 }
 0x10f   :  { %v650_v4 = vsub.f32 %v648_v63, %v649_v1  ;;  %v667_v5 = vmul.f32 %v663_v3, %v1910_v49  ;;  %v669_v6 = vmul.f32 %v663_v3, %v1914_v53  ;;  %v666_v9 = vmul.f32 %v662_v2, %v1898_v32  ;;  %v1401_v32 = vld [vmem:[%s2030_s7 + $0x18] sm:$0xff]  ;;  %v882_v3 = vld [vmem:[%s2031_s5] sm:$0x1] }
 0x110   :  { %v668_v10 = vmul.f32 %v662_v2, %v1902_v33  ;;  %956 = vmatpush.bf16.msra.mxu2 %v1401_v32  ;;  %v1404_v32 = vld [vmem:[%s2029_s8] ss:$0 sm:$0xff] }
 0x111   :  { %v671_v7 = vperm.slane %v650_v4, 0  ;;  %v672_v8 = vperm.slane %v650_v4, 1 }
 0x113   :  { %v676_v11 = vadd.f32 %v672_v8, %v667_v5  ;;  %v678_v12 = vadd.f32 %v672_v8, %v669_v6  ;;  %v675_v13 = vadd.f32 %v671_v7, %v666_v9  ;;  %v677_v14 = vadd.f32 %v671_v7, %v668_v10  ;;  %v895_v7 = vld [vmem:[%s2032_s6] sm:$0x1] }
 0x114   :  { %957 = vmatpush.bf16.msra.mxu2 %v1400_v59 }
 0x115   :  { %v680_v15 = vmax.f32 %v676_v11, 0.0  ;;  %v682_v16 = vmax.f32 %v678_v12, 0.0  ;;  %v679_v18 = vmax.f32 %v675_v13, 0.0  ;;  %v681_v55 = vmax.f32 %v677_v14, 0.0 }
 0x117   :  { %v1299_v49 = vpack.c.bf16 %v682_v16, %v680_v15  ;;  %v1296_v53 = vpack.c.bf16 %v681_v55, %v679_v18 }
 0x118   :  { %958 = vmatpush.bf16.msra.mxu2 %v1399_v27 }
 0x119   :  { %1297 = vmatmul.msk.bf16.vlgmr.msra.gmra.mxu0 %vm1295_vm8, %v1296_v53  ;;  %1300 = vmatmul.msk.bf16.vlgmr.msra.gmra.mxu1 %vm1295_vm8, %v1299_v49 }
 0x11c   :  { %959 = vmatpush.bf16.msra.mxu2 %v1398_v21 }
 0x196   :  { %v828_v33 = vpop.f32.mrf.mxu0  ;;  %v842_v62 = vpop.f32.mrf.mxu1 }
 0x197   :  { %v843_v0 = vadd.f32 %v842_v62, %v828_v33 }
 0x199   :  { %874 = vst.msk [vmem:[#allocation3] sm:$0xff] %vm848_vm9, %v843_v0  ;;  %v861_v22 = vmul.f32 %v843_v0, %v843_v0  ;;  %v849_v24 = vsel %vm848_vm9, %v843_v0, 0.0 }
 0x19b   :  { %v863_v29 = vsel %vm848_vm9, %v861_v22, 0.0 }
 0x19e   :  { %v830_v19 = vpop.f32.mrf.mxu0  ;;  %v844_v20 = vpop.f32.mrf.mxu1 }
 0x19f   :  { %v845_v23 = vadd.f32 %v844_v20, %v830_v19 }
 0x1a0   :  { %v898_v11 = vld [vmem:[#allocation3] sm:$0xff] }
 0x1a1   :  { %v850_v25 = vsel %vm848_vm9, %v845_v23, 0.0  ;;  %v862_v26 = vmul.f32 %v845_v23, %v845_v23  ;;  %875 = vst.msk [vmem:[#allocation3 + $0x8] sm:$0xff] %vm848_vm9, %v845_v23 }
 0x1a2   :  { %v851_v28 = vadd.f32 %v850_v25, %v849_v24 }
 0x1a3   :  { %v864_v30 = vsel %vm848_vm9, %v862_v26, 0.0 }
 0x1a4   :  { %v852_v31 = vrot.slane %v851_v28, 4  ;;  %v865_v34 = vadd.f32 %v864_v30, %v863_v29 }
 0x1a6   :  { %v853_v35 = vadd.f32 %v852_v31, %v851_v28  ;;  %v866_v36 = vrot.slane %v865_v34, 4 }
 0x1a8   :  { %v854_v37 = vrot.slane %v853_v35, 2  ;;  %v867_v38 = vadd.f32 %v866_v36, %v865_v34  ;;  %v899_v12 = vld [vmem:[#allocation3 + $0x8] sm:$0xff] }
 0x1aa   :  { %v855_v39 = vadd.f32 %v854_v37, %v853_v35  ;;  %v868_v40 = vrot.slane %v867_v38, 2 }
 0x1ac   :  { %v856_v41 = vrot.slane %v855_v39, 1  ;;  %v869_v17 = vadd.f32 %v868_v40, %v867_v38 }
 0x1ae   :  { %v857_v43 = vadd.f32 %v856_v41, %v855_v39  ;;  %v870_v44 = vrot.slane %v869_v17, 1 }
 0x1b0   :  { %v858_v46 = vadd.f32 %v857_v43, %v847_v42  ;;  %v871_v47 = vadd.f32 %v870_v44, %v869_v17 }
 0x1b2   :  { %859 = vst.msk [vmem:[#allocation6] sm:$0x1] %vm651_vm1, %v858_v46  ;;  %v872_v48 = vadd.f32 %v871_v47, %v860_v45 }
 0x1b4   :  { %873 = vst.msk [vmem:[#allocation7] sm:$0x1] %vm651_vm1, %v872_v48 }
 0x1b9   :  { %v876_v50 = vld [vmem:[#allocation6] sm:$0x1] }
 0x1ba   :  { %v877_v51 = vmul.f32 0.071428575, %v876_v50 }
 0x1bb   :  { %v878_v52 = vld [vmem:[#allocation7] sm:$0x1] }
 0x1bc   :  { %v879_v54 = vmul.f32 0.071428575, %v878_v52  ;;  %v880_v56 = vmul.f32 %v877_v51, %v877_v51 }
 0x1be   :  { %v881_v57 = vsub.f32 %v879_v54, %v880_v56 }
 0x1c0   :  { %v883_v58 = vadd.f32 1e-05, %v881_v57 }
 0x1c2   :  { %1407 = vrsqrt.f32 %v883_v58  ;;  %vm890_vm11 = vweird.f32 %v883_v58 }
 0x1c8   :  { %v1408_v60 = vpop.eup %1407 }
 0x1c9   :  { %v885_v61 = vmul.f32 %v1408_v60, %v883_v58  ;;  %vm891_vm10 = vweird.f32 %v1408_v60 }
 0x1ca   :  { %vm892_vm12 = vmor %vm890_vm11, %vm891_vm10 }
 0x1cb   :  { %v886_v63 = vmul.f32 %v1408_v60, %v885_v61 }
 0x1cd   :  { %v887_v1 = vmul.f32 0.5, %v886_v63 }
 0x1cf   :  { %v888_v2 = vsub.f32 1.5, %v887_v1 }
 0x1d1   :  { %v889_v4 = vmul.f32 %v1408_v60, %v888_v2 }
 0x1d3   :  { %v893_v5 = vsel %vm892_vm12, %v1408_v60, %v889_v4 }
 0x1d4   :  { %v894_v6 = vmul.f32 %v893_v5, %v882_v3 }
 0x1d6   :  { %v896_v8 = vmul.f32 %v894_v6, %v877_v51  ;;  %v901_v9 = vperm.slane %v894_v6, 0 }
 0x1d8   :  { %v897_v10 = vsub.f32 %v895_v7, %v896_v8  ;;  %v903_v13 = vmul.f32 %v901_v9, %v898_v11  ;;  %v904_v14 = vmul.f32 %v901_v9, %v899_v12 }
 0x1da   :  { %v906_v15 = vperm.slane %v897_v10, 0 }
 0x1dc   :  { %v908_v16 = vadd.f32 %v906_v15, %v903_v13  ;;  %v909_v18 = vadd.f32 %v906_v15, %v904_v14 }
 0x1de   :  { %v910_v55 = vmax.f32 %v908_v16, 0.0  ;;  %v911_v49 = vmax.f32 %v909_v18, 0.0 }
 0x1e0   :  { %v912_v53 = vpack.c.bf16 %v911_v49, %v910_v55 }
 0x1e2   :  { %1317 = vmatmul.msk.bf16.vlgmr.msra.gmra.mxu2 %vm848_vm9, %v912_v53 }
 0x265   :  { %v961_v33 = vpop.f32.mrf.mxu2 }
 0x266   :  { %v962_v62 = vadd.f32 %v1404_v32, %v961_v33 }
 0x268   :  { %967 = vst.msk [vmem:[%s2033_s9] sm:$0xff] %vm966_vm13, %v962_v62 }
 0x26d   :  { %v963_v59 = vpop.f32.mrf.mxu2 }
 0x26e   :  { %v964_v0 = vadd.f32 %v1404_v32, %v963_v59 }
 0x270   :  { %968 = vst.msk [vmem:[%s2033_s9 + $0x8] sm:$0xff] %vm966_vm13, %v964_v0 }

// kernel: scene_graph_extractor.3
= control target key start
LH: loop header
LB: loop body
LE: loop exit
PB: predicated region body
PF: predicated region fallthrough
CT: control target
= control target key end

     0   :  { %vm681_vm1 = vcmask 1040384   ;;  %vm1022_vm5 = vcmask 523264   ;;  %vm775_vm6 = vcmask 516096   ;;  %vm1198_vm10 = vcmask 64512   ;;  %s2407_s1 = inlined_call_operand.vmem [shape: bf16[512,256], index: 1, kind: input, shape index: {}]   ;;  %s2408_s0 = inlined_call_operand.vmem [shape: f32[48,512], index: 0, kind: input, shape index: {}]   ;;  %s2409_s4 = inlined_call_operand.vmem [shape: bf16[256,64], index: 4, kind: input, shape index: {}]   ;;  %s2410_s2 = inlined_call_operand.vmem [shape: f32[1,256], index: 2, kind: input, shape index: {}]   ;;  %s2411_s3 = inlined_call_operand.vmem [shape: f32[1,256], index: 3, kind: input, shape index: {}]   ;;  %s2412_s8 = inlined_call_operand.vmem [shape: f32[1,8], index: 8, kind: input, shape index: {}]   ;;  %s2413_s7 = inlined_call_operand.vmem [shape: bf16[64,8], index: 7, kind: input, shape index: {}]   ;;  %s2414_s5 = inlined_call_operand.vmem [shape: f32[1,64], index: 5, kind: input, shape index: {}]   ;;  %s2415_s6 = inlined_call_operand.vmem [shape: f32[1,64], index: 6, kind: input, shape index: {}]   ;;  %s2416_s9 = inlined_call_operand.vmem [shape: f32[48,8], index: 9, kind: output, shape index: {}]  }
   0x1   :  { %v1269_v0 = vld [vmem:[%s2407_s1 + $0x70] sm:$0xf]  ;;  %v1565_v1 = vld [vmem:[%s2407_s1 + $0x74] sm:$0xf0]  ;;  %v1261_v9 = vld [vmem:[%s2407_s1 + $0x60] sm:$0xf] }
   0x2   :  { %v1333_v2 = vld [vmem:[%s2407_s1 + $0xf0] sm:$0xf]  ;;  %v1270_v3 = vor.u32 %v1565_v1, %v1269_v0  ;;  %v1581_v4 = vld [vmem:[%s2407_s1 + $0xf4] sm:$0xf0]  ;;  %v1563_v10 = vld [vmem:[%s2407_s1 + $0x64] sm:$0xf0] }
   0x3   :  { %v1397_v5 = vld [vmem:[%s2407_s1 + $0x170] sm:$0xf]  ;;  %v1597_v6 = vld [vmem:[%s2407_s1 + $0x174] sm:$0xf0]  ;;  %v1334_v7 = vor.u32 %v1581_v4, %v1333_v2  ;;  %v1325_v11 = vld [vmem:[%s2407_s1 + $0xe0] sm:$0xf]  ;;  %v1262_v12 = vor.u32 %v1563_v10, %v1261_v9 }
   0x4   :  { %v1398_v8 = vor.u32 %v1597_v6, %v1397_v5  ;;  %1634 = vmatpush.bf16.msra.mxu3 %v1270_v3  ;;  %v1579_v13 = vld [vmem:[%s2407_s1 + $0xe4] sm:$0xf0]  ;;  %v1389_v14 = vld [vmem:[%s2407_s1 + $0x160] sm:$0xf]  ;;  %453 = vmatpush.bf16.msra.mxu0 %v1270_v3  ;;  %v1253_v18 = vld [vmem:[%s2407_s1 + $0x50] sm:$0xf] }
   0x5   :  { %v1595_v15 = vld [vmem:[%s2407_s1 + $0x164] sm:$0xf0]  ;;  %477 = vmatpush.bf16.msra.mxu1 %v1334_v7  ;;  %v1326_v16 = vor.u32 %v1579_v13, %v1325_v11  ;;  %v1561_v19 = vld [vmem:[%s2407_s1 + $0x54] sm:$0xf0]  ;;  %v1317_v20 = vld [vmem:[%s2407_s1 + $0xd0] sm:$0xf] }
   0x6   :  { %501 = vmatpush.bf16.msra.mxu2 %v1398_v8  ;;  %v1390_v17 = vor.u32 %v1595_v15, %v1389_v14  ;;  %v1577_v21 = vld [vmem:[%s2407_s1 + $0xd4] sm:$0xf0]  ;;  %v1381_v22 = vld [vmem:[%s2407_s1 + $0x150] sm:$0xf]  ;;  %v1254_v24 = vor.u32 %v1561_v19, %v1253_v18  ;;  %v1245_v27 = vld [vmem:[%s2407_s1 + $0x40] sm:$0xf] }
   0x7   :  { %v1593_v23 = vld [vmem:[%s2407_s1 + $0x154] sm:$0xf0]  ;;  %v1318_v25 = vor.u32 %v1577_v21, %v1317_v20  ;;  %v1559_v28 = vld [vmem:[%s2407_s1 + $0x44] sm:$0xf0]  ;;  %v1309_v29 = vld [vmem:[%s2407_s1 + $0xc0] sm:$0xf] }
   0x8   :  { %1635 = vmatpush.bf16.msra.mxu3 %v1262_v12  ;;  %454 = vmatpush.bf16.msra.mxu0 %v1262_v12  ;;  %v1382_v26 = vor.u32 %v1593_v23, %v1381_v22  ;;  %v1575_v30 = vld [vmem:[%s2407_s1 + $0xc4] sm:$0xf0]  ;;  %v1373_v31 = vld [vmem:[%s2407_s1 + $0x140] sm:$0xf]  ;;  %v1246_v33 = vor.u32 %v1559_v28, %v1245_v27  ;;  %v1237_v36 = vld [vmem:[%s2407_s1 + $0x30] sm:$0xf] }
   0x9   :  { %478 = vmatpush.bf16.msra.mxu1 %v1326_v16  ;;  %v1591_v32 = vld [vmem:[%s2407_s1 + $0x144] sm:$0xf0]  ;;  %v1310_v34 = vor.u32 %v1575_v30, %v1309_v29  ;;  %v1557_v37 = vld [vmem:[%s2407_s1 + $0x34] sm:$0xf0]  ;;  %v1301_v38 = vld [vmem:[%s2407_s1 + $0xb0] sm:$0xf] }
   0xa   :  { %502 = vmatpush.bf16.msra.mxu2 %v1390_v17  ;;  %v1374_v35 = vor.u32 %v1591_v32, %v1373_v31  ;;  %v1573_v39 = vld [vmem:[%s2407_s1 + $0xb4] sm:$0xf0]  ;;  %v1365_v40 = vld [vmem:[%s2407_s1 + $0x130] sm:$0xf]  ;;  %v1238_v42 = vor.u32 %v1557_v37, %v1237_v36  ;;  %v1229_v45 = vld [vmem:[%s2407_s1 + $0x20] sm:$0xf] }
   0xb   :  { %v1589_v41 = vld [vmem:[%s2407_s1 + $0x134] sm:$0xf0]  ;;  %v1302_v43 = vor.u32 %v1573_v39, %v1301_v38  ;;  %v1555_v46 = vld [vmem:[%s2407_s1 + $0x24] sm:$0xf0]  ;;  %v1293_v47 = vld [vmem:[%s2407_s1 + $0xa0] sm:$0xf] }
   0xc   :  { %1636 = vmatpush.bf16.msra.mxu3 %v1254_v24  ;;  %455 = vmatpush.bf16.msra.mxu0 %v1254_v24  ;;  %v1366_v44 = vor.u32 %v1589_v41, %v1365_v40  ;;  %v1571_v48 = vld [vmem:[%s2407_s1 + $0xa4] sm:$0xf0]  ;;  %v1357_v49 = vld [vmem:[%s2407_s1 + $0x120] sm:$0xf]  ;;  %v1230_v51 = vor.u32 %v1555_v46, %v1229_v45  ;;  %v1221_v54 = vld [vmem:[%s2407_s1 + $0x10] sm:$0xf] }
   0xd   :  { %479 = vmatpush.bf16.msra.mxu1 %v1318_v25  ;;  %v1587_v50 = vld [vmem:[%s2407_s1 + $0x124] sm:$0xf0]  ;;  %v1294_v52 = vor.u32 %v1571_v48, %v1293_v47  ;;  %v1553_v55 = vld [vmem:[%s2407_s1 + $0x14] sm:$0xf0]  ;;  %v1285_v56 = vld [vmem:[%s2407_s1 + $0x90] sm:$0xf] }
   0xe   :  { %503 = vmatpush.bf16.msra.mxu2 %v1382_v26  ;;  %v1358_v53 = vor.u32 %v1587_v50, %v1357_v49  ;;  %v1569_v57 = vld [vmem:[%s2407_s1 + $0x94] sm:$0xf0]  ;;  %v1349_v58 = vld [vmem:[%s2407_s1 + $0x110] sm:$0xf]  ;;  %v1222_v60 = vor.u32 %v1553_v55, %v1221_v54  ;;  %v1213_v61 = vld [vmem:[%s2407_s1] sm:$0xf] }
   0xf   :  { %v1585_v59 = vld [vmem:[%s2407_s1 + $0x114] sm:$0xf0]  ;;  %v1286_v62 = vor.u32 %v1569_v57, %v1285_v56  ;;  %v1551_v0 = vld [vmem:[%s2407_s1 + $0x4] sm:$0xf0]  ;;  %v1277_v1 = vld [vmem:[%s2407_s1 + $0x80] sm:$0xf] }
  0x10   :  { %1637 = vmatpush.bf16.msra.mxu3 %v1246_v33  ;;  %456 = vmatpush.bf16.msra.mxu0 %v1246_v33  ;;  %v1350_v63 = vor.u32 %v1585_v59, %v1349_v58  ;;  %v1567_v2 = vld [vmem:[%s2407_s1 + $0x84] sm:$0xf0]  ;;  %v1341_v3 = vld [vmem:[%s2407_s1 + $0x100] sm:$0xf]  ;;  %v1461_v5 = vld [vmem:[%s2407_s1 + $0x1f0] sm:$0xf]  ;;  %v1214_v9 = vor.u32 %v1551_v0, %v1213_v61 }
  0x11   :  { %480 = vmatpush.bf16.msra.mxu1 %v1310_v34  ;;  %v1583_v4 = vld [vmem:[%s2407_s1 + $0x104] sm:$0xf0]  ;;  %v1613_v6 = vld [vmem:[%s2407_s1 + $0x1f4] sm:$0xf0]  ;;  %v49_v8 = vld [vmem:[%s2408_s0 + $0x80] sm:$0xff]  ;;  %v1278_v13 = vor.u32 %v1567_v2, %v1277_v1 }
  0x12   :  { %504 = vmatpush.bf16.msra.mxu2 %v1374_v35  ;;  %v34_v7 = vld [vmem:[%s2408_s0 + $0x8] sm:$0xff]  ;;  %v53_v10 = vld [vmem:[%s2408_s0 + $0xa0] sm:$0xff]  ;;  %v1342_v14 = vor.u32 %v1583_v4, %v1341_v3  ;;  %v35_v16 = vld [vmem:[%s2408_s0 + $0x10] sm:$0xff]  ;;  %v1462_v18 = vor.u32 %v1613_v6, %v1461_v5 }
  0x13   :  { %v33_v11 = vld [vmem:[%s2408_s0] sm:$0xff]  ;;  %v38_v15 = vld [vmem:[%s2408_s0 + $0x28] sm:$0xff]  ;;  %v39_v17 = vld [vmem:[%s2408_s0 + $0x30] sm:$0xff]  ;;  %v1885_v23 = vpack.c.bf16 %v53_v10, %v49_v8 }
  0x14   :  { %1638 = vmatpush.bf16.msra.mxu3 %v1238_v42  ;;  %457 = vmatpush.bf16.msra.mxu0 %v1238_v42  ;;  %v37_v12 = vld [vmem:[%s2408_s0 + $0x20] sm:$0xff]  ;;  %v1596_v19 = vld [vmem:[%s2407_s1 + $0x174] sm:$0xf]  ;;  %v1399_v20 = vld [vmem:[%s2407_s1 + $0x178] sm:$0xf0]  ;;  %v1889_v26 = vpack.c.bf16 %v38_v15, %v34_v7  ;;  %v1891_v27 = vpack.c.bf16 %v39_v17, %v35_v16 }
  0x15   :  { %481 = vmatpush.bf16.msra.mxu1 %v1302_v43  ;;  %v1453_v21 = vld [vmem:[%s2407_s1 + $0x1e0] sm:$0xf]  ;;  %v1611_v22 = vld [vmem:[%s2407_s1 + $0x1e4] sm:$0xf0]  ;;  %v1887_v24 = vpack.c.bf16 %v37_v12, %v33_v11  ;;  %v1402_v25 = vor.u32 %v1596_v19, %v1399_v20  ;;  %v1580_v28 = vld [vmem:[%s2407_s1 + $0xf4] sm:$0xf] }
  0x16   :  { %505 = vmatpush.bf16.msra.mxu2 %v1366_v44  ;;  %v1454_v29 = vor.u32 %v1611_v22, %v1453_v21  ;;  %v1335_v30 = vld [vmem:[%s2407_s1 + $0xf8] sm:$0xf0]  ;;  %v1445_v31 = vld [vmem:[%s2407_s1 + $0x1d0] sm:$0xf]  ;;  %v1609_v32 = vld [vmem:[%s2407_s1 + $0x1d4] sm:$0xf0] }
  0x17   :  { %v1338_v33 = vor.u32 %v1580_v28, %v1335_v30  ;;  %v1594_v34 = vld [vmem:[%s2407_s1 + $0x164] sm:$0xf]  ;;  %v1391_v35 = vld [vmem:[%s2407_s1 + $0x168] sm:$0xf0]  ;;  %v1446_v39 = vor.u32 %v1609_v32, %v1445_v31  ;;  %v1437_v40 = vld [vmem:[%s2407_s1 + $0x1c0] sm:$0xf] }
  0x18   :  { %1639 = vmatpush.bf16.msra.mxu3 %v1230_v51  ;;  %458 = vmatpush.bf16.msra.mxu0 %v1230_v51  ;;  %v1394_v36 = vor.u32 %v1594_v34, %v1391_v35  ;;  %v1578_v37 = vld [vmem:[%s2407_s1 + $0xe4] sm:$0xf]  ;;  %v1327_v38 = vld [vmem:[%s2407_s1 + $0xe8] sm:$0xf0]  ;;  %v1607_v41 = vld [vmem:[%s2407_s1 + $0x1c4] sm:$0xf0] }
  0x19   :  { %482 = vmatpush.bf16.msra.mxu1 %v1294_v52  ;;  %v1330_v42 = vor.u32 %v1578_v37, %v1327_v38  ;;  %v1592_v43 = vld [vmem:[%s2407_s1 + $0x154] sm:$0xf]  ;;  %v1383_v44 = vld [vmem:[%s2407_s1 + $0x158] sm:$0xf0]  ;;  %v1562_v51 = vld [vmem:[%s2407_s1 + $0x64] sm:$0xf] }
  0x1a   :  { %506 = vmatpush.bf16.msra.mxu2 %v1358_v53  ;;  %v1564_v45 = vld [vmem:[%s2407_s1 + $0x74] sm:$0xf]  ;;  %v1271_v46 = vld [vmem:[%s2407_s1 + $0x78] sm:$0xf0]  ;;  %v1386_v47 = vor.u32 %v1592_v43, %v1383_v44  ;;  %v1263_v52 = vld [vmem:[%s2407_s1 + $0x68] sm:$0xf0]  ;;  %v1438_v53 = vor.u32 %v1607_v41, %v1437_v40 }
  0x1b   :  { %v1274_v48 = vor.u32 %v1564_v45, %v1271_v46  ;;  %v1576_v49 = vld [vmem:[%s2407_s1 + $0xd4] sm:$0xf]  ;;  %v1319_v50 = vld [vmem:[%s2407_s1 + $0xd8] sm:$0xf0]  ;;  %v1266_v55 = vor.u32 %v1562_v51, %v1263_v52  ;;  %v1429_v56 = vld [vmem:[%s2407_s1 + $0x1b0] sm:$0xf] }
  0x1c   :  { %1640 = vmatpush.bf16.msra.mxu3 %v1222_v60  ;;  %459 = vmatpush.bf16.msra.mxu0 %v1222_v60  ;;  %v1322_v54 = vor.u32 %v1576_v49, %v1319_v50  ;;  %v1605_v57 = vld [vmem:[%s2407_s1 + $0x1b4] sm:$0xf0]  ;;  %v42_v58 = vld [vmem:[%s2408_s0 + $0x48] sm:$0xff]  ;;  %v41_v59 = vld [vmem:[%s2408_s0 + $0x40] sm:$0xff] }
  0x1d   :  { %483 = vmatpush.bf16.msra.mxu1 %v1286_v62  ;;  %v45_v60 = vld [vmem:[%s2408_s0 + $0x60] sm:$0xff]  ;;  %v46_v61 = vld [vmem:[%s2408_s0 + $0x68] sm:$0xff]  ;;  %v43_v62 = vld [vmem:[%s2408_s0 + $0x50] sm:$0xff]  ;;  %v1430_v0 = vor.u32 %v1605_v57, %v1429_v56 }
  0x1e   :  { %507 = vmatpush.bf16.msra.mxu2 %v1350_v63  ;;  %v47_v63 = vld [vmem:[%s2408_s0 + $0x70] sm:$0xff]  ;;  %v1421_v1 = vld [vmem:[%s2407_s1 + $0x1a0] sm:$0xf]  ;;  %v1603_v2 = vld [vmem:[%s2407_s1 + $0x1a4] sm:$0xf0]  ;;  %v1981_v3 = vpack.c.bf16 %v45_v60, %v41_v59  ;;  %v1983_v4 = vpack.c.bf16 %v46_v61, %v42_v58 }
  0x1f   :  { %v1985_v5 = vpack.c.bf16 %v47_v63, %v43_v62  ;;  %v1413_v6 = vld [vmem:[%s2407_s1 + $0x190] sm:$0xf]  ;;  %v1590_v7 = vld [vmem:[%s2407_s1 + $0x144] sm:$0xf]  ;;  %v1375_v8 = vld [vmem:[%s2407_s1 + $0x148] sm:$0xf0] }
  0x20   :  { %1641 = vmatpush.bf16.msra.mxu3 %v1214_v9  ;;  %460 = vmatpush.bf16.msra.mxu0 %v1214_v9  ;;  %v1422_v9 = vor.u32 %v1603_v2, %v1421_v1  ;;  %v1601_v10 = vld [vmem:[%s2407_s1 + $0x194] sm:$0xf0]  ;;  %v1378_v11 = vor.u32 %v1590_v7, %v1375_v8  ;;  %v1560_v12 = vld [vmem:[%s2407_s1 + $0x54] sm:$0xf]  ;;  %v1574_v15 = vld [vmem:[%s2407_s1 + $0xc4] sm:$0xf] }
  0x21   :  { %484 = vmatpush.bf16.msra.mxu1 %v1278_v13  ;;  %v1255_v13 = vld [vmem:[%s2407_s1 + $0x58] sm:$0xf0]  ;;  %v1311_v16 = vld [vmem:[%s2407_s1 + $0xc8] sm:$0xf0]  ;;  %v1588_v17 = vld [vmem:[%s2407_s1 + $0x134] sm:$0xf]  ;;  %v1414_v30 = vor.u32 %v1601_v10, %v1413_v6 }
  0x22   :  { %508 = vmatpush.bf16.msra.mxu2 %v1342_v14  ;;  %v1258_v14 = vor.u32 %v1560_v12, %v1255_v13  ;;  %v1367_v19 = vld [vmem:[%s2407_s1 + $0x138] sm:$0xf0]  ;;  %v1558_v20 = vld [vmem:[%s2407_s1 + $0x44] sm:$0xf]  ;;  %v1247_v21 = vld [vmem:[%s2407_s1 + $0x48] sm:$0xf0] }
  0x23   :  { %471 = vmatmul.bf16.vlgmr.msra.gmra.mxu3 %v1885_v23  ;;  %461 = vmatmul.bf16.vlgmr.msra.gmra.mxu0 %v1887_v24  ;;  %v1405_v22 = vld [vmem:[%s2407_s1 + $0x180] sm:$0xf]  ;;  %v1250_v28 = vor.u32 %v1558_v20, %v1247_v21  ;;  %v1303_v31 = vld [vmem:[%s2407_s1 + $0xb8] sm:$0xf0]  ;;  %v1556_v32 = vld [vmem:[%s2407_s1 + $0x34] sm:$0xf] }
  0x24   :  { %525 = vmatpush.bf16.msrb.mxu3 %v1462_v18  ;;  %485 = vmatmul.bf16.vlgmr.msra.gmra.mxu1 %v1889_v26  ;;  %v1314_v18 = vor.u32 %v1574_v15, %v1311_v16  ;;  %v1599_v34 = vld [vmem:[%s2407_s1 + $0x184] sm:$0xf0]  ;;  %v1359_v37 = vld [vmem:[%s2407_s1 + $0x128] sm:$0xf0]  ;;  %v1612_v38 = vld [vmem:[%s2407_s1 + $0x1f4] sm:$0xf] }
  0x25   :  { %509 = vmatmul.bf16.vlgmr.msra.gmra.mxu2 %v1891_v27  ;;  %573 = vmatpush.bf16.msrb.mxu1 %v1338_v33  ;;  %v1239_v33 = vld [vmem:[%s2407_s1 + $0x38] sm:$0xf0]  ;;  %v1570_v43 = vld [vmem:[%s2407_s1 + $0xa4] sm:$0xf]  ;;  %v1295_v44 = vld [vmem:[%s2407_s1 + $0xa8] sm:$0xf0]  ;;  %v1406_v45 = vor.u32 %v1599_v34, %v1405_v22 }
  0x26   :  { %597 = vmatpush.bf16.msrb.mxu2 %v1402_v25  ;;  %549 = vmatpush.bf16.msrb.mxu0 %v1274_v48  ;;  %v1370_v25 = vor.u32 %v1588_v17, %v1367_v19  ;;  %v36_v40 = vld [vmem:[%s2408_s0 + $0x18] sm:$0xff]  ;;  %v1242_v41 = vor.u32 %v1556_v32, %v1239_v33  ;;  %v1231_v48 = vld [vmem:[%s2407_s1 + $0x28] sm:$0xf0]  ;;  %v1298_v49 = vor.u32 %v1570_v43, %v1295_v44  ;;  %v1584_v51 = vld [vmem:[%s2407_s1 + $0x114] sm:$0xf] }
  0x27   :  { %v40_v46 = vld [vmem:[%s2408_s0 + $0x38] sm:$0xff]  ;;  %v54_v57 = vld [vmem:[%s2408_s0 + $0xa8] sm:$0xff]  ;;  %v51_v58 = vld [vmem:[%s2408_s0 + $0x90] sm:$0xff] }
  0x28   :  { %526 = vmatpush.bf16.msrb.mxu3 %v1454_v29  ;;  %v1572_v29 = vld [vmem:[%s2407_s1 + $0xb4] sm:$0xf]  ;;  %v1351_v52 = vld [vmem:[%s2407_s1 + $0x118] sm:$0xf0]  ;;  %v2089_v56 = vpack.c.bf16 %v40_v46, %v36_v40  ;;  %v1343_v12 = vld [vmem:[%s2407_s1 + $0x108] sm:$0xf0] }
  0x29   :  { %574 = vmatpush.bf16.msrb.mxu1 %v1330_v42  ;;  %v1306_v35 = vor.u32 %v1572_v29, %v1303_v31  ;;  %v55_v59 = vld [vmem:[%s2408_s0 + $0xb0] sm:$0xff]  ;;  %v1354_v61 = vor.u32 %v1584_v51, %v1351_v52  ;;  %v1447_v2 = vld [vmem:[%s2407_s1 + $0x1d8] sm:$0xf0]  ;;  %v1439_v15 = vld [vmem:[%s2407_s1 + $0x1c8] sm:$0xf0] }
  0x2a   :  { %598 = vmatpush.bf16.msrb.mxu2 %v1394_v36  ;;  %550 = vmatpush.bf16.msrb.mxu0 %v1266_v55  ;;  %v1586_v36 = vld [vmem:[%s2407_s1 + $0x124] sm:$0xf]  ;;  %v1455_v55 = vld [vmem:[%s2407_s1 + $0x1e8] sm:$0xf0]  ;;  %v1608_v1 = vld [vmem:[%s2407_s1 + $0x1d4] sm:$0xf] }
  0x2b   :  { %v1362_v42 = vor.u32 %v1586_v36, %v1359_v37  ;;  %v1552_v6 = vld [vmem:[%s2407_s1 + $0x14] sm:$0xf]  ;;  %v1223_v7 = vld [vmem:[%s2407_s1 + $0x18] sm:$0xf0]  ;;  %v1450_v13 = vor.u32 %v1608_v1, %v1447_v2  ;;  %v1215_v19 = vld [vmem:[%s2407_s1 + $0x8] sm:$0xf0] }
  0x2c   :  { %527 = vmatpush.bf16.msrb.mxu3 %v1446_v39  ;;  %v1463_v39 = vld [vmem:[%s2407_s1 + $0x1f8] sm:$0xf0]  ;;  %v1568_v8 = vld [vmem:[%s2407_s1 + $0x94] sm:$0xf]  ;;  %v1566_v20 = vld [vmem:[%s2407_s1 + $0x84] sm:$0xf] }
  0x2d   :  { %575 = vmatpush.bf16.msrb.mxu1 %v1322_v54  ;;  %v1466_v50 = vor.u32 %v1612_v38, %v1463_v39  ;;  %v1610_v54 = vld [vmem:[%s2407_s1 + $0x1e4] sm:$0xf]  ;;  %v1287_v10 = vld [vmem:[%s2407_s1 + $0x98] sm:$0xf0]  ;;  %v1279_v21 = vld [vmem:[%s2407_s1 + $0x88] sm:$0xf0] }
  0x2e   :  { %599 = vmatpush.bf16.msrb.mxu2 %v1386_v47  ;;  %551 = vmatpush.bf16.msrb.mxu0 %v1258_v14  ;;  %v1554_v47 = vld [vmem:[%s2407_s1 + $0x24] sm:$0xf]  ;;  %v1458_v62 = vor.u32 %v1610_v54, %v1455_v55  ;;  %v1290_v16 = vor.u32 %v1568_v8, %v1287_v10  ;;  %v1604_v29 = vld [vmem:[%s2407_s1 + $0x1b4] sm:$0xf]  ;;  %v44_v31 = vld [vmem:[%s2408_s0 + $0x58] sm:$0xff] }
  0x2f   :  { %v1234_v60 = vor.u32 %v1554_v47, %v1231_v48  ;;  %v1606_v14 = vld [vmem:[%s2407_s1 + $0x1c4] sm:$0xf]  ;;  %v48_v32 = vld [vmem:[%s2408_s0 + $0x78] sm:$0xff]  ;;  %v1600_v38 = vld [vmem:[%s2407_s1 + $0x194] sm:$0xf] }
  0x30   :  { %528 = vmatpush.bf16.msrb.mxu3 %v1438_v53  ;;  %v50_v53 = vld [vmem:[%s2408_s0 + $0x88] sm:$0xff]  ;;  %v1602_v34 = vld [vmem:[%s2407_s1 + $0x1a4] sm:$0xf]  ;;  %v64_v36 = vpack.c.bf16 %v48_v32, %v44_v31  ;;  %v1415_v39 = vld [vmem:[%s2407_s1 + $0x198] sm:$0xf0]  ;;  %v1648_v31 = vmov 0.0  }
  0x31   :  { %576 = vmatpush.bf16.msrb.mxu1 %v1314_v18  ;;  %v2100_v63 = vpack.c.bf16 %v54_v57, %v50_v53  ;;  %v1550_v18 = vld [vmem:[%s2407_s1 + $0x4] sm:$0xf]  ;;  %v1418_v40 = vor.u32 %v1600_v38, %v1415_v39  ;;  %v52_v43 = vld [vmem:[%s2408_s0 + $0x98] sm:$0xff]  ;;  %776 = vst.msk [vmem:[#allocation6] sm:$0x1] %vm775_vm6, %v1648_v31 }
  0x32   :  { %600 = vmatpush.bf16.msrb.mxu2 %v1378_v11  ;;  %552 = vmatpush.bf16.msrb.mxu0 %v1250_v28  ;;  %v1582_v11 = vld [vmem:[%s2407_s1 + $0x104] sm:$0xf]  ;;  %v1218_v22 = vor.u32 %v1550_v18, %v1215_v19  ;;  %v1442_v28 = vor.u32 %v1606_v14, %v1439_v15  ;;  %777 = vst.msk [vmem:[#allocation7] sm:$0x1] %vm775_vm6, %v1648_v31 }
  0x33   :  { %466 = vmatmul.bf16.gmra.mxu0 %v1981_v3  ;;  %v1346_v17 = vor.u32 %v1582_v11, %v1343_v12 }
  0x34   :  { %529 = vmatpush.bf16.msrb.mxu3 %v1430_v0  ;;  %490 = vmatmul.bf16.gmra.mxu1 %v1983_v4  ;;  %v2102_v0 = vpack.c.bf16 %v55_v59, %v51_v58 }
  0x35   :  { %514 = vmatmul.bf16.gmra.mxu2 %v1985_v5  ;;  %577 = vmatpush.bf16.msrb.mxu1 %v1306_v35  ;;  %v1423_v35 = vld [vmem:[%s2407_s1 + $0x1a8] sm:$0xf0] }
  0x36   :  { %601 = vmatpush.bf16.msrb.mxu2 %v1370_v25  ;;  %553 = vmatpush.bf16.msrb.mxu0 %v1242_v41  ;;  %v1282_v25 = vor.u32 %v1566_v20, %v1279_v21  ;;  %v1426_v37 = vor.u32 %v1602_v34, %v1423_v35  ;;  %v1407_v41 = vld [vmem:[%s2407_s1 + $0x188] sm:$0xf0] }
  0x38   :  { %530 = vmatpush.bf16.msrb.mxu3 %v1422_v9  ;;  %v1226_v9 = vor.u32 %v1552_v6, %v1223_v7 }
  0x39   :  { %578 = vmatpush.bf16.msrb.mxu1 %v1298_v49 }
  0x3a   :  { %602 = vmatpush.bf16.msrb.mxu2 %v1362_v42  ;;  %554 = vmatpush.bf16.msrb.mxu0 %v1234_v60 }
  0x3c   :  { %531 = vmatpush.bf16.msrb.mxu3 %v1414_v30  ;;  %v1431_v30 = vld [vmem:[%s2407_s1 + $0x1b8] sm:$0xf0] }
  0x3d   :  { %579 = vmatpush.bf16.msrb.mxu1 %v1290_v16  ;;  %v1434_v33 = vor.u32 %v1604_v29, %v1431_v30 }
  0x3e   :  { %603 = vmatpush.bf16.msrb.mxu2 %v1354_v61  ;;  %555 = vmatpush.bf16.msrb.mxu0 %v1226_v9 }
  0x40   :  { %532 = vmatpush.bf16.msrb.mxu3 %v1406_v45 }
  0x41   :  { %580 = vmatpush.bf16.msrb.mxu1 %v1282_v25  ;;  %v649_v25 = vlaneseq }
  0x42   :  { %604 = vmatpush.bf16.msrb.mxu2 %v1346_v17  ;;  %556 = vmatpush.bf16.msrb.mxu0 %v1218_v22 }
  0x43   :  { %533 = vmatmul.bf16.vlgmr.msrb.gmra.mxu3 %v2089_v56  ;;  %vm2201_vm0 = vcmp.lt.s32.totalorder %v649_v25, 256 }
  0x44   :  { %621 = vmatpush.bf16.msra.mxu3 %v1466_v50  ;;  %495 = vmatmul.bf16.gmra.mxu1 %v2100_v63  ;;  %653 = vst.msk [vmem:[#allocation4] sm:$0x3] %vm2201_vm0, %v1648_v31 }
  0x45   :  { %519 = vmatmul.bf16.gmra.mxu2 %v2102_v0  ;;  %557 = vmatmul.bf16.vlgmr.msrb.gmra.mxu0 %v1887_v24  ;;  %v1598_v24 = vld [vmem:[%s2407_s1 + $0x184] sm:$0xf]  ;;  %654 = vst.msk [vmem:[#allocation5] sm:$0x3] %vm2201_vm0, %v1648_v31  ;;  %v1632_v31 = vld [vmem:[%s2413_s7 + $0x10] sm:$0xff] }
  0x46   :  { %v1410_v42 = vor.u32 %v1598_v24, %v1407_v41 }
  0x48   :  { %622 = vmatpush.bf16.msra.mxu3 %v1458_v62 }
  0x4c   :  { %623 = vmatpush.bf16.msra.mxu3 %v1450_v13 }
  0x50   :  { %624 = vmatpush.bf16.msra.mxu3 %v1442_v28 }
  0x53   :  { %538 = vmatmul.bf16.gmra.mxu3 %v64_v36 }
  0x54   :  { %625 = vmatpush.bf16.msra.mxu3 %v1434_v33  ;;  %581 = vmatmul.bf16.vlgmr.msrb.gmra.mxu1 %v1889_v26 }
  0x55   :  { %605 = vmatmul.bf16.vlgmr.msrb.gmra.mxu2 %v1891_v27  ;;  %v56_v27 = vld [vmem:[%s2408_s0 + $0xb8] sm:$0xff]  ;;  %562 = vmatmul.bf16.gmra.mxu0 %v1981_v3 }
  0x56   :  { %v68_v26 = vpack.c.bf16 %v56_v27, %v52_v43 }
  0x58   :  { %626 = vmatpush.bf16.msra.mxu3 %v1426_v37 }
  0x5c   :  { %627 = vmatpush.bf16.msra.mxu3 %v1418_v40 }
  0x60   :  { %628 = vmatpush.bf16.msra.mxu3 %v1410_v42 }
  0x63   :  { %543 = vmatmul.bf16.gmra.mxu3 %v68_v26 }
  0x64   :  { %586 = vmatmul.bf16.gmra.mxu1 %v1983_v4 }
  0x65   :  { %610 = vmatmul.bf16.gmra.mxu2 %v1985_v5  ;;  %567 = vmatmul.bf16.gmra.mxu0 %v1885_v23 }
  0x73   :  { %629 = vmatmul.bf16.vlgmr.msra.gmra.mxu3 %v2089_v56 }
  0x74   :  { %591 = vmatmul.bf16.gmra.mxu1 %v2100_v63 }
  0x75   :  { %615 = vmatmul.bf16.gmra.mxu2 %v2102_v0 }
  0x83   :  { %634 = vmatmul.bf16.gmra.mxu3 %v64_v36 }
  0x93   :  { %639 = vmatmul.bf16.gmra.mxu3 %v68_v26 }
  0xa0   :  { %v462_v44 = vpop.f32.mrf.mxu0 }
  0xa1   :  { %v486_v45 = vpop.f32.mrf.mxu1 }
  0xa2   :  { %v487_v46 = vadd.f32 %v486_v45, %v462_v44 }
  0xa6   :  { %v472_v51 = vpop.f32.mrf.mxu3 }
  0xa8   :  { %v510_v3 = vpop.f32.mrf.mxu2  ;;  %v464_v49 = vpop.f32.mrf.mxu0 }
  0xa9   :  { %v511_v47 = vadd.f32 %v510_v3, %v487_v46  ;;  %v488_v48 = vpop.f32.mrf.mxu1 }
  0xaa   :  { %v489_v5 = vadd.f32 %v488_v48, %v464_v49 }
  0xae   :  { %v474_v56 = vpop.f32.mrf.mxu3 }
  0xb0   :  { %v512_v50 = vpop.f32.mrf.mxu2  ;;  %v467_v52 = vpop.f32.mrf.mxu0 }
  0xb1   :  { %v513_v4 = vadd.f32 %v512_v50, %v489_v5  ;;  %v491_v23 = vpop.f32.mrf.mxu1 }
  0xb2   :  { %v492_v53 = vadd.f32 %v491_v23, %v467_v52 }
  0xb8   :  { %v515_v54 = vpop.f32.mrf.mxu2  ;;  %v469_v6 = vpop.f32.mrf.mxu0 }
  0xb9   :  { %v516_v55 = vadd.f32 %v515_v54, %v492_v53  ;;  %v493_v59 = vpop.f32.mrf.mxu1 }
  0xba   :  { %v494_v32 = vadd.f32 %v493_v59, %v469_v6 }
  0xc0   :  { %v517_v60 = vpop.f32.mrf.mxu2 }
  0xc1   :  { %v496_v63 = vpop.f32.mrf.mxu1  ;;  %v518_v36 = vadd.f32 %v517_v60, %v494_v32 }
  0xc2   :  { %v558_v10 = vpop.f32.mrf.mxu0  ;;  %v497_v35 = vadd.f32 %v496_v63, %v472_v51 }
  0xc6   :  { %v534_v57 = vpop.f32.mrf.mxu3 }
  0xc7   :  { %v2195_v58 = vadd.f32 %v534_v57, %v511_v47 }
  0xc8   :  { %v520_v0 = vpop.f32.mrf.mxu2 }
  0xc9   :  { %v498_v7 = vpop.f32.mrf.mxu1  ;;  %v521_v39 = vadd.f32 %v520_v0, %v497_v35  ;;  %v691_v43 = vmul.f32 %v2195_v58, %v2195_v58 }
  0xca   :  { %v560_v14 = vpop.f32.mrf.mxu0  ;;  %v499_v40 = vadd.f32 %v498_v7, %v474_v56 }
  0xce   :  { %v536_v61 = vpop.f32.mrf.mxu3 }
  0xcf   :  { %v2197_v62 = vadd.f32 %v536_v61, %v513_v4 }
  0xd0   :  { %v522_v9 = vpop.f32.mrf.mxu2 }
  0xd1   :  { %v582_v11 = vpop.f32.mrf.mxu1  ;;  %v693_v37 = vmul.f32 %v2197_v62, %v2197_v62  ;;  %v656_v44 = vadd.f32 %v2197_v62, %v2195_v58  ;;  %v523_v45 = vadd.f32 %v522_v9, %v499_v40 }
  0xd2   :  { %v563_v19 = vpop.f32.mrf.mxu0  ;;  %v583_v41 = vadd.f32 %v582_v11, %v558_v10 }
  0xd3   :  { %v703_v48 = vadd.f32 %v693_v37, %v691_v43 }
  0xd6   :  { %v539_v1 = vpop.f32.mrf.mxu3 }
  0xd7   :  { %v2199_v2 = vadd.f32 %v539_v1, %v516_v55 }
  0xd8   :  { %v606_v13 = vpop.f32.mrf.mxu2 }
  0xd9   :  { %v584_v16 = vpop.f32.mrf.mxu1  ;;  %v695_v46 = vmul.f32 %v2199_v2, %v2199_v2  ;;  %v657_v49 = vadd.f32 %v656_v44, %v2199_v2  ;;  %v607_v50 = vadd.f32 %v606_v13, %v583_v41 }
  0xda   :  { %v565_v28 = vpop.f32.mrf.mxu0  ;;  %v585_v27 = vadd.f32 %v584_v16, %v560_v14 }
  0xdb   :  { %v704_v55 = vadd.f32 %v703_v48, %v695_v46  ;;  %v1629_v48 = vld [vmem:[%s2409_s4 + $0x78] sm:$0xff] }
  0xdc   :  { %997 = vmatpush.bf16.msra.mxu1 %v1629_v48 }
  0xde   :  { %v541_v8 = vpop.f32.mrf.mxu3 }
  0xdf   :  { %v2213_v24 = vadd.f32 %v541_v8, %v518_v36 }
  0xe0   :  { %v608_v17 = vpop.f32.mrf.mxu2 }
  0xe1   :  { %v587_v20 = vpop.f32.mrf.mxu1  ;;  %v697_v5 = vmul.f32 %v2213_v24, %v2213_v24  ;;  %v609_v23 = vadd.f32 %v608_v17, %v585_v27  ;;  %v658_v57 = vadd.f32 %v657_v49, %v2213_v24 }
  0xe2   :  { %v568_v38 = vpop.f32.mrf.mxu0  ;;  %v588_v26 = vadd.f32 %v587_v20, %v563_v19 }
  0xe3   :  { %v705_v60 = vadd.f32 %v704_v55, %v697_v5 }
  0xe6   :  { %v544_v12 = vpop.f32.mrf.mxu3 }
  0xe7   :  { %v2221_v3 = vadd.f32 %v544_v12, %v521_v39 }
  0xe8   :  { %v611_v21 = vpop.f32.mrf.mxu2 }
  0xe9   :  { %v589_v30 = vpop.f32.mrf.mxu1  ;;  %v612_v52 = vadd.f32 %v611_v21, %v588_v26  ;;  %v699_v56 = vmul.f32 %v2221_v3, %v2221_v3  ;;  %v659_v0 = vadd.f32 %v658_v57, %v2221_v3 }
  0xea   :  { %v590_v53 = vadd.f32 %v589_v30, %v565_v28  ;;  %v570_v8 = vpop.f32.mrf.mxu0 }
  0xeb   :  { %v706_v9 = vadd.f32 %v705_v60, %v699_v56 }
  0xee   :  { %v546_v15 = vpop.f32.mrf.mxu3 }
  0xef   :  { %v2226_v4 = vadd.f32 %v546_v15, %v523_v45 }
  0xf0   :  { %v613_v33 = vpop.f32.mrf.mxu2 }
  0xf1   :  { %v592_v42 = vpop.f32.mrf.mxu1  ;;  %v701_v61 = vmul.f32 %v2226_v4, %v2226_v4  ;;  %v614_v1 = vadd.f32 %v613_v33, %v590_v53  ;;  %v660_v12 = vadd.f32 %v659_v0, %v2226_v4  ;;  %v1620_v53 = vld [vmem:[%s2409_s4 + $0x30] sm:$0xff] }
  0xf2   :  { %v593_v54 = vadd.f32 %v592_v42, %v568_v38 }
  0xf3   :  { %v707_v15 = vadd.f32 %v706_v9, %v701_v61 }
  0xf5   :  { %v708_v32 = vrot.slane %v707_v15, 4 }
  0xf6   :  { %v630_v18 = vpop.f32.mrf.mxu3 }
  0xf7   :  { %v2235_v63 = vadd.f32 %v630_v18, %v607_v50  ;;  %v709_v42 = vadd.f32 %v708_v32, %v707_v15  ;;  %v1625_v32 = vld [vmem:[%s2409_s4 + $0x58] sm:$0xff] }
  0xf8   :  { %v616_v51 = vpop.f32.mrf.mxu2 }
  0xf9   :  { %v617_v7 = vadd.f32 %v616_v51, %v593_v54  ;;  %v594_v10 = vpop.f32.mrf.mxu1  ;;  %v692_v16 = vmul.f32 %v2235_v63, %v2235_v63  ;;  %v710_v49 = vrot.slane %v709_v42, 2  ;;  %v1628_v54 = vld [vmem:[%s2409_s4 + $0x70] sm:$0xff] }
  0xfa   :  { %v595_v19 = vadd.f32 %v594_v10, %v570_v8  ;;  %998 = vmatpush.bf16.msra.mxu1 %v1628_v54 }
  0xfb   :  { %v711_v55 = vadd.f32 %v710_v49, %v709_v42  ;;  %v1622_v42 = vld [vmem:[%s2409_s4 + $0x40] sm:$0xff] }
  0xfd   :  { %v712_v8 = vrot.slane %v711_v55, 1 }
  0xfe   :  { %v632_v22 = vpop.f32.mrf.mxu3 }
  0xff   :  { %v2231_v59 = vadd.f32 %v632_v22, %v609_v23  ;;  %v661_v22 = vrot.slane %v660_v12, 4 }
 0x100   :  { %v618_v21 = vpop.f32.mrf.mxu2 }
 0x101   :  { %v694_v13 = vmul.f32 %v2231_v59, %v2231_v59  ;;  %v667_v17 = vadd.f32 %v2231_v59, %v2235_v63  ;;  %v619_v35 = vadd.f32 %v618_v21, %v595_v19  ;;  %v662_v38 = vadd.f32 %v661_v22, %v660_v12  ;;  %v655_v12 = vld [vmem:[#allocation4] sm:$0x3]  ;;  %v690_v21 = vld [vmem:[#allocation5] sm:$0x3] }
 0x103   :  { %v714_v25 = vadd.f32 %v694_v13, %v692_v16  ;;  %v663_v44 = vrot.slane %v662_v38, 2  ;;  %v1618_v16 = vld [vmem:[%s2409_s4 + $0x20] sm:$0xff] }
 0x105   :  { %v664_v51 = vadd.f32 %v663_v44, %v662_v38 }
 0x106   :  { %v635_v34 = vpop.f32.mrf.mxu3 }
 0x107   :  { %v2238_v6 = vadd.f32 %v635_v34, %v612_v52  ;;  %v665_v60 = vrot.slane %v664_v51, 1 }
 0x109   :  { %v696_v18 = vmul.f32 %v2238_v6, %v2238_v6  ;;  %v668_v28 = vadd.f32 %v667_v17, %v2238_v6  ;;  %v1626_v17 = vld [vmem:[%s2409_s4 + $0x60] sm:$0xff] }
 0x10b   :  { %v715_v33 = vadd.f32 %v714_v25, %v696_v18  ;;  %v713_v18 = vadd.f32 %v712_v8, %v711_v55 }
 0x10e   :  { %v637_v47 = vpop.f32.mrf.mxu3 }
 0x10f   :  { %v2243_v14 = vadd.f32 %v637_v47, %v614_v1  ;;  %v1621_v47 = vld [vmem:[%s2409_s4 + $0x38] sm:$0xff]  ;;  %v1619_v1 = vld [vmem:[%s2409_s4 + $0x28] sm:$0xff] }
 0x110   :  { %973 = vmatpush.bf16.msra.mxu0 %v1621_v47 }
 0x111   :  { %v698_v30 = vmul.f32 %v2243_v14, %v2243_v14  ;;  %v669_v34 = vadd.f32 %v668_v28, %v2243_v14 }
 0x113   :  { %v716_v39 = vadd.f32 %v715_v33, %v698_v30  ;;  %v1617_v30 = vld [vmem:[%s2409_s4 + $0x18] sm:$0xff] }
 0x114   :  { %974 = vmatpush.bf16.msra.mxu0 %v1620_v53 }
 0x116   :  { %v640_v11 = vpop.f32.mrf.mxu3 }
 0x117   :  { %v2251_v20 = vadd.f32 %v640_v11, %v617_v7  ;;  %v1627_v7 = vld [vmem:[%s2409_s4 + $0x68] sm:$0xff]  ;;  %v666_v11 = vadd.f32 %v665_v60, %v664_v51 }
 0x118   :  { %975 = vmatpush.bf16.msra.mxu0 %v1619_v1  ;;  %999 = vmatpush.bf16.msra.mxu1 %v1627_v7 }
 0x119   :  { %v700_v36 = vmul.f32 %v2251_v20, %v2251_v20  ;;  %v670_v40 = vadd.f32 %v669_v34, %v2251_v20  ;;  %v1616_v34 = vld [vmem:[%s2409_s4 + $0x10] sm:$0xff] }
 0x11b   :  { %v717_v43 = vadd.f32 %v716_v39, %v700_v36  ;;  %v1615_v36 = vld [vmem:[%s2409_s4 + $0x8] sm:$0xff] }
 0x11c   :  { %976 = vmatpush.bf16.msra.mxu0 %v1618_v16  ;;  %1000 = vmatpush.bf16.msra.mxu1 %v1626_v17 }
 0x11e   :  { %v642_v37 = vpop.f32.mrf.mxu3 }
 0x11f   :  { %v2260_v41 = vadd.f32 %v642_v37, %v619_v35  ;;  %v1624_v35 = vld [vmem:[%s2409_s4 + $0x50] sm:$0xff]  ;;  %v1623_v37 = vld [vmem:[%s2409_s4 + $0x48] sm:$0xff] }
 0x120   :  { %977 = vmatpush.bf16.msra.mxu0 %v1617_v30  ;;  %1001 = vmatpush.bf16.msra.mxu1 %v1625_v32 }
 0x121   :  { %v671_v27 = vadd.f32 %v670_v40, %v2260_v41  ;;  %v702_v26 = vmul.f32 %v2260_v41, %v2260_v41  ;;  %v1614_v40 = vld [vmem:[%s2409_s4] sm:$0xff] }
 0x123   :  { %v672_v45 = vrot.slane %v671_v27, 4  ;;  %v718_v46 = vadd.f32 %v717_v43, %v702_v26 }
 0x124   :  { %978 = vmatpush.bf16.msra.mxu0 %v1616_v34  ;;  %1002 = vmatpush.bf16.msra.mxu1 %v1624_v35 }
 0x125   :  { %v673_v5 = vadd.f32 %v672_v45, %v671_v27  ;;  %v719_v50 = vrot.slane %v718_v46, 4 }
 0x127   :  { %v674_v23 = vrot.slane %v673_v5, 2  ;;  %v720_v52 = vadd.f32 %v719_v50, %v718_v46 }
 0x128   :  { %979 = vmatpush.bf16.msra.mxu0 %v1615_v36  ;;  %1003 = vmatpush.bf16.msra.mxu1 %v1623_v37 }
 0x129   :  { %v675_v56 = vadd.f32 %v674_v23, %v673_v5  ;;  %v721_v57 = vrot.slane %v720_v52, 2  ;;  %v759_v5 = vld [vmem:[%s2410_s2] sm:$0x3] }
 0x12b   :  { %v676_v61 = vrot.slane %v675_v56, 1  ;;  %v722_v0 = vadd.f32 %v721_v57, %v720_v52  ;;  %v772_v52 = vld [vmem:[%s2411_s3] sm:$0x3] }
 0x12c   :  { %980 = vmatpush.bf16.msra.mxu0 %v1614_v40  ;;  %1004 = vmatpush.bf16.msra.mxu1 %v1622_v42 }
 0x12d   :  { %v677_v9 = vadd.f32 %v676_v61, %v675_v56  ;;  %v723_v10 = vrot.slane %v722_v0, 1 }
 0x12f   :  { %v680_v13 = vrot.slane %v677_v9, 7  ;;  %v724_v15 = vadd.f32 %v723_v10, %v722_v0 }
 0x131   :  { %v682_v19 = vsel %vm681_vm1, %v666_v11, %v680_v13  ;;  %v727_v22 = vrot.slane %v724_v15, 7 }
 0x132   :  { %v684_v25 = vadd.f32 %v682_v19, %v655_v12 }
 0x133   :  { %v728_v28 = vsel %vm681_vm1, %v713_v18, %v727_v22 }
 0x134   :  { %689 = vst.msk [vmem:[#allocation4] sm:$0x3] %vm2201_vm0, %v684_v25  ;;  %v730_v33 = vadd.f32 %v728_v28, %v690_v21 }
 0x136   :  { %731 = vst.msk [vmem:[#allocation5] sm:$0x3] %vm2201_vm0, %v730_v33 }
 0x13b   :  { %v753_v29 = vld [vmem:[#allocation4] sm:$0x3] }
 0x13c   :  { %v754_v38 = vmul.f32 0.020833334, %v753_v29 }
 0x13d   :  { %v755_v39 = vld [vmem:[#allocation5] sm:$0x3] }
 0x13e   :  { %v756_v43 = vmul.f32 0.020833334, %v755_v39  ;;  %v757_v27 = vmul.f32 %v754_v38, %v754_v38 }
 0x140   :  { %v758_v26 = vsub.f32 %v756_v43, %v757_v27 }
 0x142   :  { %v760_v44 = vadd.f32 1e-05, %v758_v26 }
 0x144   :  { %1644 = vrsqrt.f32 %v760_v44  ;;  %vm767_vm3 = vweird.f32 %v760_v44 }
 0x14a   :  { %v1645_v45 = vpop.eup %1644 }
 0x14b   :  { %v762_v46 = vmul.f32 %v1645_v45, %v760_v44  ;;  %vm768_vm2 = vweird.f32 %v1645_v45 }
 0x14c   :  { %vm769_vm4 = vmor %vm767_vm3, %vm768_vm2 }
 0x14d   :  { %v763_v47 = vmul.f32 %v1645_v45, %v762_v46 }
 0x14f   :  { %v764_v48 = vmul.f32 0.5, %v763_v47 }
 0x151   :  { %v765_v49 = vsub.f32 1.5, %v764_v48 }
 0x153   :  { %v766_v50 = vmul.f32 %v1645_v45, %v765_v49 }
 0x155   :  { %v770_v51 = vsel %vm769_vm4, %v1645_v45, %v766_v50 }
 0x156   :  { %v771_v23 = vmul.f32 %v770_v51, %v759_v5  ;;  %v1633_v51 = vld [vmem:[%s2413_s7 + $0x18] sm:$0xff] }
 0x157   :  { %1178 = vmatpush.bf16.msra.mxu2 %v1633_v51 }
 0x158   :  { %v795_v53 = vperm.slane %v771_v23, 1  ;;  %v773_v54 = vmul.f32 %v771_v23, %v754_v38  ;;  %v794_v55 = vperm.slane %v771_v23, 0 }
 0x15a   :  { %v774_v56 = vsub.f32 %v772_v52, %v773_v54  ;;  %v798_v57 = vmul.f32 %v794_v55, %v2195_v58  ;;  %v800_v60 = vmul.f32 %v794_v55, %v2197_v62  ;;  %v799_v0 = vmul.f32 %v795_v53, %v2235_v63 }
 0x15b   :  { %v801_v1 = vmul.f32 %v795_v53, %v2231_v59  ;;  %v802_v58 = vmul.f32 %v794_v55, %v2199_v2  ;;  %v804_v62 = vmul.f32 %v794_v55, %v2213_v24  ;;  %v803_v63 = vmul.f32 %v795_v53, %v2238_v6  ;;  %1179 = vmatpush.bf16.msra.mxu2 %v1632_v31 }
 0x15c   :  { %v811_v61 = vperm.slane %v774_v56, 0  ;;  %v812_v7 = vperm.slane %v774_v56, 1  ;;  %v805_v59 = vmul.f32 %v795_v53, %v2243_v14  ;;  %v809_v2 = vmul.f32 %v795_v53, %v2260_v41 }
 0x15d   :  { %v806_v24 = vmul.f32 %v794_v55, %v2221_v3  ;;  %v808_v6 = vmul.f32 %v794_v55, %v2226_v4  ;;  %v807_v14 = vmul.f32 %v795_v53, %v2251_v20 }
 0x15e   :  { %v815_v8 = vadd.f32 %v811_v61, %v798_v57  ;;  %v817_v9 = vadd.f32 %v811_v61, %v800_v60  ;;  %v816_v10 = vadd.f32 %v812_v7, %v799_v0  ;;  %v818_v11 = vadd.f32 %v812_v7, %v801_v1 }
 0x15f   :  { %v819_v19 = vadd.f32 %v811_v61, %v802_v58  ;;  %v821_v21 = vadd.f32 %v811_v61, %v804_v62  ;;  %v820_v22 = vadd.f32 %v812_v7, %v803_v63  ;;  %v822_v25 = vadd.f32 %v812_v7, %v805_v59  ;;  %v1630_v59 = vld [vmem:[%s2413_s7] sm:$0xff] }
 0x160   :  { %v827_v12 = vmax.f32 %v815_v8, 0.0  ;;  %v829_v13 = vmax.f32 %v817_v9, 0.0  ;;  %v828_v15 = vmax.f32 %v816_v10, 0.0  ;;  %v830_v16 = vmax.f32 %v818_v11, 0.0  ;;  %v1631_v8 = vld [vmem:[%s2413_s7 + $0x8] sm:$0xff] }
 0x161   :  { %v831_v28 = vmax.f32 %v819_v19, 0.0  ;;  %v833_v30 = vmax.f32 %v821_v21, 0.0  ;;  %v832_v32 = vmax.f32 %v820_v22, 0.0  ;;  %v834_v33 = vmax.f32 %v822_v25, 0.0  ;;  %1180 = vmatpush.bf16.msra.mxu2 %v1631_v8 }
 0x162   :  { %v839_v17 = vpack.c.bf16 %v829_v13, %v827_v12  ;;  %v840_v18 = vpack.c.bf16 %v830_v16, %v828_v15  ;;  %v823_v36 = vadd.f32 %v811_v61, %v806_v24  ;;  %v825_v37 = vadd.f32 %v811_v61, %v808_v6 }
 0x163   :  { %v841_v34 = vpack.c.bf16 %v833_v30, %v831_v28  ;;  %v842_v35 = vpack.c.bf16 %v834_v33, %v832_v32  ;;  %v824_v29 = vadd.f32 %v812_v7, %v807_v14  ;;  %v826_v38 = vadd.f32 %v812_v7, %v809_v2 }
 0x164   :  { %981 = vmatmul.bf16.vlgmr.msra.gmra.mxu0 %v839_v17  ;;  %1005 = vmatmul.bf16.vlgmr.msra.gmra.mxu1 %v840_v18  ;;  %v835_v39 = vmax.f32 %v823_v36, 0.0  ;;  %v837_v40 = vmax.f32 %v825_v37, 0.0 }
 0x165   :  { %v836_v42 = vmax.f32 %v824_v29, 0.0  ;;  %v838_v43 = vmax.f32 %v826_v38, 0.0  ;;  %1181 = vmatpush.bf16.msra.mxu2 %v1630_v59 }
 0x166   :  { %v843_v27 = vpack.c.bf16 %v837_v40, %v835_v39  ;;  %v1021_v40 = vld [vmem:[#allocation6] sm:$0x1] }
 0x167   :  { %v844_v26 = vpack.c.bf16 %v838_v43, %v836_v42 }
 0x174   :  { %986 = vmatmul.bf16.gmra.mxu0 %v841_v34  ;;  %1010 = vmatmul.bf16.gmra.mxu1 %v842_v35 }
 0x184   :  { %991 = vmatmul.bf16.gmra.mxu0 %v843_v27  ;;  %1015 = vmatmul.bf16.gmra.mxu1 %v844_v26  ;;  %v1042_v27 = vld [vmem:[#allocation7] sm:$0x1] }
 0x1e1   :  { %v982_v44 = vpop.f32.mrf.mxu0  ;;  %v1006_v41 = vpop.f32.mrf.mxu1 }
 0x1e2   :  { %v1007_v3 = vadd.f32 %v1006_v41, %v982_v44 }
 0x1e4   :  { %1068 = vst.msk [vmem:[#allocation3] sm:$0xff] %vm1022_vm5, %v1007_v3  ;;  %v1043_v54 = vmul.f32 %v1007_v3, %v1007_v3  ;;  %v1023_v60 = vsel %vm1022_vm5, %v1007_v3, 0.0 }
 0x1e6   :  { %v1049_v9 = vsel %vm1022_vm5, %v1043_v54, 0.0 }
 0x1e9   :  { %v984_v4 = vpop.f32.mrf.mxu0  ;;  %v1008_v20 = vpop.f32.mrf.mxu1 }
 0x1ea   :  { %v1009_v45 = vadd.f32 %v1008_v20, %v984_v4 }
 0x1ec   :  { %1069 = vst.msk [vmem:[#allocation3 + $0x8] sm:$0xff] %vm1022_vm5, %v1009_v45  ;;  %v1044_v23 = vmul.f32 %v1009_v45, %v1009_v45  ;;  %v1024_v55 = vsel %vm1022_vm5, %v1009_v45, 0.0 }
 0x1ed   :  { %v1025_v7 = vadd.f32 %v1024_v55, %v1023_v60  ;;  %v1093_v55 = vld [vmem:[%s2415_s6] sm:$0x1] }
 0x1ee   :  { %v1050_v61 = vsel %vm1022_vm5, %v1044_v23, 0.0 }
 0x1ef   :  { %v1051_v13 = vadd.f32 %v1050_v61, %v1049_v9  ;;  %v1096_v61 = vld [vmem:[#allocation3] sm:$0xff] }
 0x1f1   :  { %v987_v46 = vpop.f32.mrf.mxu0  ;;  %v1011_v47 = vpop.f32.mrf.mxu1 }
 0x1f2   :  { %v1012_v48 = vadd.f32 %v1011_v47, %v987_v46 }
 0x1f4   :  { %1070 = vst.msk [vmem:[#allocation3 + $0x10] sm:$0xff] %vm1022_vm5, %v1012_v48  ;;  %v1045_v56 = vmul.f32 %v1012_v48, %v1012_v48  ;;  %v1026_v0 = vsel %vm1022_vm5, %v1012_v48, 0.0 }
 0x1f5   :  { %v1027_v15 = vadd.f32 %v1026_v0, %v1025_v7  ;;  %v1097_v0 = vld [vmem:[#allocation3 + $0x8] sm:$0xff] }
 0x1f6   :  { %v1052_v10 = vsel %vm1022_vm5, %v1045_v56, 0.0 }
 0x1f7   :  { %v1053_v18 = vadd.f32 %v1052_v10, %v1051_v13 }
 0x1f9   :  { %v989_v49 = vpop.f32.mrf.mxu0  ;;  %v1013_v5 = vpop.f32.mrf.mxu1 }
 0x1fa   :  { %v1014_v50 = vadd.f32 %v1013_v5, %v989_v49 }
 0x1fc   :  { %1071 = vst.msk [vmem:[#allocation3 + $0x18] sm:$0xff] %vm1022_vm5, %v1014_v50  ;;  %v1046_v1 = vmul.f32 %v1014_v50, %v1014_v50  ;;  %v1028_v11 = vsel %vm1022_vm5, %v1014_v50, 0.0 }
 0x1fd   :  { %v1029_v58 = vadd.f32 %v1028_v11, %v1027_v15  ;;  %v1098_v15 = vld [vmem:[#allocation3 + $0x10] sm:$0xff] }
 0x1fe   :  { %v1054_v16 = vsel %vm1022_vm5, %v1046_v1, 0.0 }
 0x1ff   :  { %v1055_v22 = vadd.f32 %v1054_v16, %v1053_v18 }
 0x201   :  { %v992_v52 = vpop.f32.mrf.mxu0  ;;  %v1016_v53 = vpop.f32.mrf.mxu1 }
 0x202   :  { %v1017_v57 = vadd.f32 %v1016_v53, %v992_v52  ;;  %v1080_v52 = vld [vmem:[%s2414_s5] sm:$0x1] }
 0x203   :  { %v1099_v16 = vld [vmem:[#allocation3 + $0x18] sm:$0xff] }
 0x204   :  { %1072 = vst.msk [vmem:[#allocation3 + $0x20] sm:$0xff] %vm1022_vm5, %v1017_v57  ;;  %v1047_v12 = vmul.f32 %v1017_v57, %v1017_v57  ;;  %v1030_v17 = vsel %vm1022_vm5, %v1017_v57, 0.0 }
 0x205   :  { %v1031_v25 = vadd.f32 %v1030_v17, %v1029_v58 }
 0x206   :  { %v1056_v19 = vsel %vm1022_vm5, %v1047_v12, 0.0 }
 0x207   :  { %v1057_v32 = vadd.f32 %v1056_v19, %v1055_v22 }
 0x209   :  { %v994_v62 = vpop.f32.mrf.mxu0  ;;  %v1018_v63 = vpop.f32.mrf.mxu1 }
 0x20a   :  { %v1019_v21 = vadd.f32 %v1018_v63, %v994_v62 }
 0x20c   :  { %v1032_v28 = vsel %vm1022_vm5, %v1019_v21, 0.0  ;;  %v1048_v30 = vmul.f32 %v1019_v21, %v1019_v21  ;;  %1073 = vst.msk [vmem:[#allocation3 + $0x28] sm:$0xff] %vm1022_vm5, %v1019_v21  ;;  %v1100_v21 = vld [vmem:[#allocation3 + $0x20] sm:$0xff] }
 0x20d   :  { %v1033_v33 = vadd.f32 %v1032_v28, %v1031_v25 }
 0x20e   :  { %v1058_v34 = vsel %vm1022_vm5, %v1048_v30, 0.0 }
 0x20f   :  { %v1034_v35 = vrot.slane %v1033_v33, 4  ;;  %v1059_v2 = vadd.f32 %v1058_v34, %v1057_v32 }
 0x211   :  { %v1035_v24 = vadd.f32 %v1034_v35, %v1033_v33  ;;  %v1060_v6 = vrot.slane %v1059_v2, 4 }
 0x213   :  { %v1036_v14 = vrot.slane %v1035_v24, 2  ;;  %v1061_v36 = vadd.f32 %v1060_v6, %v1059_v2  ;;  %v1101_v22 = vld [vmem:[#allocation3 + $0x28] sm:$0xff]  ;;  %v1643_v2 = vld [vmem:[%s2412_s8] ss:$0 sm:$0xff] }
 0x215   :  { %v1037_v37 = vadd.f32 %v1036_v14, %v1035_v24  ;;  %v1062_v29 = vrot.slane %v1061_v36, 2 }
 0x217   :  { %v1038_v38 = vrot.slane %v1037_v37, 1  ;;  %v1063_v39 = vadd.f32 %v1062_v29, %v1061_v36 }
 0x219   :  { %v1039_v42 = vadd.f32 %v1038_v38, %v1037_v37  ;;  %v1064_v43 = vrot.slane %v1063_v39, 1 }
 0x21b   :  { %v1040_v26 = vadd.f32 %v1039_v42, %v1021_v40  ;;  %v1065_v44 = vadd.f32 %v1064_v43, %v1063_v39 }
 0x21d   :  { %1041 = vst.msk [vmem:[#allocation6] sm:$0x1] %vm775_vm6, %v1040_v26  ;;  %v1066_v41 = vadd.f32 %v1065_v44, %v1042_v27 }
 0x21f   :  { %1067 = vst.msk [vmem:[#allocation7] sm:$0x1] %vm775_vm6, %v1066_v41 }
 0x224   :  { %v1074_v3 = vld [vmem:[#allocation6] sm:$0x1] }
 0x225   :  { %v1075_v4 = vmul.f32 0.020833334, %v1074_v3 }
 0x226   :  { %v1076_v20 = vld [vmem:[#allocation7] sm:$0x1] }
 0x227   :  { %v1077_v45 = vmul.f32 0.020833334, %v1076_v20  ;;  %v1078_v46 = vmul.f32 %v1075_v4, %v1075_v4 }
 0x229   :  { %v1079_v47 = vsub.f32 %v1077_v45, %v1078_v46 }
 0x22b   :  { %v1081_v48 = vadd.f32 1e-05, %v1079_v47 }
 0x22d   :  { %1646 = vrsqrt.f32 %v1081_v48  ;;  %vm1088_vm8 = vweird.f32 %v1081_v48 }
 0x233   :  { %v1647_v49 = vpop.eup %1646 }
 0x234   :  { %v1083_v5 = vmul.f32 %v1647_v49, %v1081_v48  ;;  %vm1089_vm7 = vweird.f32 %v1647_v49 }
 0x235   :  { %vm1090_vm9 = vmor %vm1088_vm8, %vm1089_vm7 }
 0x236   :  { %v1084_v50 = vmul.f32 %v1647_v49, %v1083_v5 }
 0x238   :  { %v1085_v51 = vmul.f32 0.5, %v1084_v50 }
 0x23a   :  { %v1086_v23 = vsub.f32 1.5, %v1085_v51 }
 0x23c   :  { %v1087_v53 = vmul.f32 %v1647_v49, %v1086_v23 }
 0x23e   :  { %v1091_v31 = vsel %vm1090_vm9, %v1647_v49, %v1087_v53 }
 0x23f   :  { %v1092_v54 = vmul.f32 %v1091_v31, %v1080_v52 }
 0x241   :  { %v1094_v56 = vmul.f32 %v1092_v54, %v1075_v4  ;;  %v1103_v57 = vperm.slane %v1092_v54, 0 }
 0x243   :  { %v1095_v60 = vsub.f32 %v1093_v55, %v1094_v56  ;;  %v1105_v1 = vmul.f32 %v1103_v57, %v1096_v61  ;;  %v1106_v7 = vmul.f32 %v1103_v57, %v1097_v0  ;;  %v1107_v17 = vmul.f32 %v1103_v57, %v1098_v15 }
 0x244   :  { %v1108_v18 = vmul.f32 %v1103_v57, %v1099_v16  ;;  %v1109_v25 = vmul.f32 %v1103_v57, %v1100_v21  ;;  %v1110_v28 = vmul.f32 %v1103_v57, %v1101_v22 }
 0x245   :  { %v1112_v8 = vperm.slane %v1095_v60, 0 }
 0x247   :  { %v1114_v9 = vadd.f32 %v1112_v8, %v1105_v1  ;;  %v1115_v10 = vadd.f32 %v1112_v8, %v1106_v7  ;;  %v1116_v58 = vadd.f32 %v1112_v8, %v1107_v17  ;;  %v1117_v62 = vadd.f32 %v1112_v8, %v1108_v18 }
 0x248   :  { %v1118_v30 = vadd.f32 %v1112_v8, %v1109_v25  ;;  %v1119_v32 = vadd.f32 %v1112_v8, %v1110_v28 }
 0x249   :  { %v1120_v11 = vmax.f32 %v1114_v9, 0.0  ;;  %v1121_v12 = vmax.f32 %v1115_v10, 0.0  ;;  %v1122_v63 = vmax.f32 %v1116_v58, 0.0  ;;  %v1123_v59 = vmax.f32 %v1117_v62, 0.0 }
 0x24a   :  { %v1124_v33 = vmax.f32 %v1118_v30, 0.0  ;;  %v1125_v34 = vmax.f32 %v1119_v32, 0.0 }
 0x24b   :  { %v1126_v13 = vpack.c.bf16 %v1121_v12, %v1120_v11  ;;  %v1127_v19 = vpack.c.bf16 %v1123_v59, %v1122_v63 }
 0x24c   :  { %v1128_v35 = vpack.c.bf16 %v1125_v34, %v1124_v33 }
 0x24d   :  { %1547 = vmatmul.msk.bf16.vlgmr.msra.gmra.mxu2 %vm1022_vm5, %v1126_v13 }
 0x25d   :  { %1548 = vmatmul.msk.bf16.gmra.mxu2 %vm1022_vm5, %v1127_v19 }
 0x26d   :  { %1549 = vmatmul.msk.bf16.gmra.mxu2 %vm1022_vm5, %v1128_v35 }
 0x2d0   :  { %v1183_v24 = vpop.f32.mrf.mxu2 }
 0x2d1   :  { %v1184_v6 = vadd.f32 %v1643_v2, %v1183_v24 }
 0x2d3   :  { %1199 = vst.msk [vmem:[%s2416_s9] sm:$0xff] %vm1198_vm10, %v1184_v6 }
 0x2d8   :  { %v1185_v14 = vpop.f32.mrf.mxu2 }
 0x2d9   :  { %v1186_v36 = vadd.f32 %v1643_v2, %v1185_v14 }
 0x2db   :  { %1200 = vst.msk [vmem:[%s2416_s9 + $0x8] sm:$0xff] %vm1198_vm10, %v1186_v36 }
 0x2e0   :  { %v1188_v37 = vpop.f32.mrf.mxu2 }
 0x2e1   :  { %v1189_v29 = vadd.f32 %v1643_v2, %v1188_v37 }
 0x2e3   :  { %1201 = vst.msk [vmem:[%s2416_s9 + $0x10] sm:$0xff] %vm1198_vm10, %v1189_v29 }
 0x2e8   :  { %v1190_v38 = vpop.f32.mrf.mxu2 }
 0x2e9   :  { %v1191_v39 = vadd.f32 %v1643_v2, %v1190_v38 }
 0x2eb   :  { %1202 = vst.msk [vmem:[%s2416_s9 + $0x18] sm:$0xff] %vm1198_vm10, %v1191_v39 }
 0x2f0   :  { %v1193_v40 = vpop.f32.mrf.mxu2 }
 0x2f1   :  { %v1194_v42 = vadd.f32 %v1643_v2, %v1193_v40 }
 0x2f3   :  { %1203 = vst.msk [vmem:[%s2416_s9 + $0x20] sm:$0xff] %vm1198_vm10, %v1194_v42 }
 0x2f8   :  { %v1195_v43 = vpop.f32.mrf.mxu2 }
 0x2f9   :  { %v1196_v27 = vadd.f32 %v1643_v2, %v1195_v43 }
 0x2fb   :  { %1204 = vst.msk [vmem:[%s2416_s9 + $0x28] sm:$0xff] %vm1198_vm10, %v1196_v27 }

</bundles_post_ra>
